<compile_context>
chip_gen: v6e
topology: v6e:2x2x1
jax: 0.10.0
libtpu: 0.0.40
codegen_flags: <defaults>
</compile_context>

<pallas_src>
import math
from functools import partial

import numpy as np
import jax
import jax.numpy as jnp
from jax.experimental import pallas as pl
from jax.experimental.pallas import tpu as pltpu

TWO_PI = 2.0 * math.pi


def _complex_embedding_kernel(ids_ref, table_ref, real_ref, imag_ref, gath_ref,
                              *, seq_len, d_model, vocab_chunk, tokens_per_step):
    """One grid step: `tokens_per_step` tokens x one vocab chunk.

    ids_ref   : (T, 1)    int32  token ids for this token block
    table_ref : (Vc, 9*D) bf16   [hi | mid | lo] planes of the fused f32 table
    real_ref  : (T, D)           output (written at last vocab chunk)
    imag_ref  : (T, D)           output (written at last vocab chunk)
    gath_ref  : (T, 3*D)  f32    VMEM scratch accumulating gathered rows
    """
    T, D, Vc = tokens_per_step, d_model, vocab_chunk
    ti = pl.program_id(0)
    vc = pl.program_id(1)

    @pl.when(vc == 0)
    def _():
        gath_ref[...] = jnp.zeros_like(gath_ref)

    ids = ids_ref[...]                                             # (T, 1) int32
    # One-hot over this vocab chunk only; 0/1 are exact in bf16.
    one_hot = ((ids - vc * Vc) ==
               jax.lax.broadcasted_iota(jnp.int32, (T, Vc), 1)
               ).astype(jnp.bfloat16)                              # (T, Vc)

    # Single native-bf16 MXU pass over the hi|mid|lo planes.
    g = jnp.dot(one_hot, table_ref[...],
                preferred_element_type=jnp.float32)                # (T, 9D)
    # Exact f32 reconstruction of the selected rows: hi + mid + lo.
    gath_ref[...] += (g[:, 0 * 3 * D:1 * 3 * D]
                      + g[:, 1 * 3 * D:2 * 3 * D]
                      + g[:, 2 * 3 * D:3 * 3 * D])

    @pl.when(vc == pl.num_programs(1) - 1)
    def _():
        gathered = gath_ref[...]                                   # (T, 3D) f32
        amp = gathered[:, 0 * D:1 * D]
        freq = gathered[:, 1 * D:2 * D]
        bias = gathered[:, 2 * D:3 * D]                            # already % 2pi
        # 1-based position within the sequence (torch.arange(1, L+1)).
        tok = ti * T + jax.lax.broadcasted_iota(jnp.int32, (T, 1), 0)
        pos = (jnp.remainder(tok, seq_len) + 1).astype(jnp.float32)   # (T, 1)
        out_phase = pos * freq + bias
        real_ref[...] = (amp * jnp.cos(out_phase)).astype(real_ref.dtype)
        imag_ref[...] = (amp * jnp.sin(out_phase)).astype(imag_ref.dtype)


def _split_f32_to_3x_bf16(w):
    """Exact 3-way bf16 split: hi + mid + lo == w (f32), element-wise."""
    hi = w.astype(jnp.bfloat16)
    r1 = w - hi.astype(jnp.float32)
    mid = r1.astype(jnp.bfloat16)
    lo = (r1 - mid.astype(jnp.float32)).astype(jnp.bfloat16)
    return hi, mid, lo


def complex_embedding(x, word_w, freq_w, phase_w, *, tokens_per_step=512,
                      max_vocab_chunk=2048, out_dtype=jnp.float32):
    """x: (B, L) int token ids; *_w: (V, D) float32 embedding tables.

    Returns (real, imag), each (B, L, D) with dtype `out_dtype`.
    tokens_per_step: sweep 1024-2048 on v5e/v6e (HBM-writeback-bound); keep
    512-1024 on v7x (tighter VMEM).
    """
    B, L = x.shape
    V, D = word_w.shape
    N = B * L

    # ---- Weight-only preprocessing (hoisted out of the kernel) --------------
    phase_mod = jnp.mod(phase_w, TWO_PI)
    base = jnp.concatenate([word_w, freq_w, phase_mod], axis=1)    # (V, 3D) f32

    # Pad vocab to a multiple of the MXU contraction tile (256 also covers
    # v5e's 128); zero rows are never selected by the one-hot.
    V_ALIGN = 256
    if V <= max_vocab_chunk:
        Vp = -(-V // V_ALIGN) * V_ALIGN
        Vc = Vp
    else:
        Vc = max(V_ALIGN, (max_vocab_chunk // V_ALIGN) * V_ALIGN)
        Vp = -(-V // Vc) * Vc
    Gv = Vp // Vc
    if Vp != V:
        base = jnp.pad(base, ((0, Vp - V), (0, 0)))

    hi, mid, lo = _split_f32_to_3x_bf16(base)
    table = jnp.concatenate([hi, mid, lo], axis=1)                 # (Vp, 9D) bf16

    # ---- Token tiling --------------------------------------------------------
    T = min(tokens_per_step, N)
    T = max(8, -(-T // 8) * 8)
    Gt = -(-N // T)
    N_pad = Gt * T

    ids = x.reshape(-1).astype(jnp.int32)
    if N_pad != N:
        ids = jnp.pad(ids, (0, N_pad - N))           # pad with id 0 (sliced off)
    ids = ids.reshape(N_pad, 1)

    kernel = partial(_complex_embedding_kernel, seq_len=L, d_model=D,
                     vocab_chunk=Vc, tokens_per_step=T)
    out_sz = np.dtype(out_dtype).itemsize

    def _launch(table_spec, table_buffers):
        grid_spec = pltpu.PrefetchScalarGridSpec(
            num_scalar_prefetch=0,
            grid=(Gt, Gv),
            in_specs=[
                pl.BlockSpec((T, 1), lambda ti, vc: (ti, 0)),      # token ids
                table_spec,                                        # stacked table
            ],
            out_specs=[
                pl.BlockSpec((T, D), lambda ti, vc: (ti, 0)),      # real
                pl.BlockSpec((T, D), lambda ti, vc: (ti, 0)),      # imag
            ],
            scratch_shapes=[pltpu.VMEM((T, 3 * D), jnp.float32)],  # gathered rows
        )

        # VMEM inventory: table blocks, double-buffered ids ((T,1) int32 pads
        # to 128 lanes) and outputs, gathered scratch, one-hot + matmul
        # intermediates, plus compiler-scratch headroom.
        vmem_bytes = (table_buffers * Vc * 9 * D * 2
                      + 2 * T * 128 * 4
                      + 2 * 2 * T * D * out_sz
                      + T * 3 * D * 4
                      + T * Vc * 4
                      + T * 9 * D * 4
                      + (8 << 20))
        vmem_bytes = min(int(vmem_bytes), 56 << 20)   # stay under v7x 64 MiB/TC

        table_reads = 1 if Gv == 1 else Gt
        cost = pl.CostEstimate(
            # One native-bf16 MXU pass over (Vc, 9D) per (token-block, chunk).
            flops=2 * N_pad * Vp * 9 * D + 8 * N_pad * D,
            transcendentals=2 * N_pad * D,
            bytes_accessed=(N_pad * 4 + table_reads * table.size * 2
                            + 2 * N_pad * D * out_sz),
        )

        return pl.pallas_call(
            kernel,
            grid_spec=grid_spec,
            out_shape=(jax.ShapeDtypeStruct((N_pad, D), out_dtype),
                       jax.ShapeDtypeStruct((N_pad, D), out_dtype)),
            compiler_params=pltpu.CompilerParams(
                # TODO(synk): verify in a trace that the token axis shards
                # across both TensorCores on v7x; switch to pltpu.CORE_PARALLEL
                # if it does not.
                dimension_semantics=(pltpu.PARALLEL, pltpu.ARBITRARY),
                vmem_limit_bytes=vmem_bytes),
            cost_estimate=cost,
        )(ids, table)

    if Gv == 1:
        # Grid-invariant table: request a single VMEM buffer (halves the
        # dominant VMEM consumer).  Fall back to default double-buffering if
        # this JAX build rejects Buffered(1).
        try:
            real, imag = _launch(
                pl.BlockSpec((Vc, 9 * D), lambda ti, vc: (0, 0),
                             pipeline_mode=pl.Buffered(1)),
                table_buffers=1)
        except Exception:
            real, imag = _launch(
                pl.BlockSpec((Vc, 9 * D), lambda ti, vc: (0, 0)),
                table_buffers=2)
    else:
        # Streamed vocab chunks: keep default double-buffering so the next
        # chunk's DMA overlaps the current chunk's matmul.
        real, imag = _launch(
            pl.BlockSpec((Vc, 9 * D), lambda ti, vc: (vc, 0)),
            table_buffers=2)

    real = real[:N].reshape(B, L, D)
    imag = imag[:N].reshape(B, L, D)
    return real, imag


def _reference(x, word_w, freq_w, phase_w):
    # Pure-JAX reference mirroring the PyTorch forward.
    B, L = x.shape
    amp = word_w[x]                       # (B, L, D)
    freq = freq_w[x]                      # (B, L, D)
    bias = jnp.mod(phase_w, TWO_PI)[x]    # (B, L, D)
    pos = jnp.arange(1, L + 1, dtype=jnp.float32)[None, :, None]
    out_phase = pos * freq + bias
    return amp * jnp.cos(out_phase), amp * jnp.sin(out_phase)


if __name__ == "__main__":
    d_model = 128      # lane-aligned embedding width
    B, L = 2, 8

    key = jax.random.PRNGKey(0)
    k_ids, k_w, k_f, k_p = jax.random.split(key, 4)

    # --- Test 1: small vocab, single resident chunk ---------------------------
    vocab_size = 32
    x = jax.random.randint(k_ids, (B, L), 0, vocab_size, dtype=jnp.int32)
    word_w = jax.random.normal(k_w, (vocab_size, d_model), dtype=jnp.float32)
    freq_w = jax.random.normal(k_f, (vocab_size, d_model), dtype=jnp.float32)
    phase_w = jax.random.normal(k_p, (vocab_size, d_model), dtype=jnp.float32)

    real, imag = complex_embedding(x, word_w, freq_w, phase_w)
    jax.block_until_ready((real, imag))

    ref_real, ref_imag = _reference(x, word_w, freq_w, phase_w)
    assert real.shape == (B, L, d_model) and imag.shape == (B, L, d_model)
    assert jnp.allclose(real, ref_real, atol=1e-5, rtol=1e-5)
    assert jnp.allclose(imag, ref_imag, atol=1e-5, rtol=1e-5)

    # --- Test 2: exercise the streamed (chunked-vocab) path -------------------
    V2 = 600
    x2 = jax.random.randint(k_ids, (B, L), 0, V2, dtype=jnp.int32)
    w2 = jax.random.normal(k_w, (V2, d_model), dtype=jnp.float32)
    f2 = jax.random.normal(k_f, (V2, d_model), dtype=jnp.float32)
    p2 = jax.random.normal(k_p, (V2, d_model), dtype=jnp.float32)

    r2, i2 = complex_embedding(x2, w2, f2, p2, max_vocab_chunk=256)
    jax.block_until_ready((r2, i2))

    rr2, ri2 = _reference(x2, w2, f2, p2)
    assert jnp.allclose(r2, rr2, atol=1e-5, rtol=1e-5)
    assert jnp.allclose(i2, ri2, atol=1e-5, rtol=1e-5)

    print("KERNEL_OK")
</pallas_src>

<mosaic_0001>
module attributes {stable_mosaic.version = 11 : i64} {
  func.func @_complex_embedding_kernel(%arg0: i32, %arg1: i32, %arg2: memref<16x1xi32, #tpu.memory_space<vmem>>, %arg3: memref<256x1152xbf16, #tpu.memory_space<vmem>>, %arg4: memref<16x128xf32, #tpu.memory_space<vmem>>, %arg5: memref<16x128xf32, #tpu.memory_space<vmem>>, %arg6: memref<16x384xf32, #tpu.memory_space<vmem>>) attributes {dimension_semantics = [#tpu.dimension_semantics<parallel>, #tpu.dimension_semantics<arbitrary>], iteration_bounds = array<i64: 1, 1>, scalar_prefetch = 0 : i64, scratch_operands = 1 : i64, tpu.core_type = #tpu.core_type<tc>, window_params = [{transform_indices = @transform_0, window_bounds = array<i64: 16, 1>}, {pipeline_mode = #tpu.pipeline_mode<synchronous>, transform_indices = @transform_1, window_bounds = array<i64: 256, 1152>}, {transform_indices = @transform_2, window_bounds = array<i64: 16, 128>}, {transform_indices = @transform_3, window_bounds = array<i64: 16, 128>}]} {
    %c0_i32 = arith.constant 0 : i32
    %0 = arith.cmpi eq, %arg1, %c0_i32 : i32
    %1 = arith.extui %0 : i1 to i32
    %c0_i32_0 = arith.constant 0 : i32
    %2 = arith.cmpi ne, %1, %c0_i32_0 : i32
    scf.if %2 {
      %cst_10 = arith.constant 0.000000e+00 : f32
      %26 = vector.broadcast %cst_10 : f32 to vector<16x384xf32>
      %c0_11 = arith.constant 0 : index
      %c0_12 = arith.constant 0 : index
      %27 = vector.load %arg6[%c0_11, %c0_12] : memref<16x384xf32, #tpu.memory_space<vmem>>, vector<16x384xf32>
      tpu.vector_store %arg6[%c0_11, %c0_12], %26 {strides = array<i32>} : memref<16x384xf32, #tpu.memory_space<vmem>>, vector<16x384xf32>,
    } else {
    }
    %c0 = arith.constant 0 : index
    %c0_1 = arith.constant 0 : index
    %3 = vector.load %arg2[%c0, %c0_1] : memref<16x1xi32, #tpu.memory_space<vmem>>, vector<16x1xi32>
    %c256_i32 = arith.constant 256 : i32
    %4 = arith.muli %arg1, %c256_i32 : i32
    %5 = vector.broadcast %4 : i32 to vector<16x1xi32>
    %6 = arith.subi %3, %5 : vector<16x1xi32>
    %7 = tpu.iota {dimensions = array<i32: 1>} : vector<16x256xi32>
    %8 = vector.broadcast %6 : vector<16x1xi32> to vector<16x256xi32>
    %9 = arith.cmpi eq, %8, %7 : vector<16x256xi32>
    %10 = arith.extui %9 : vector<16x256xi1> to vector<16x256xi32>
    %11 = arith.sitofp %10 : vector<16x256xi32> to vector<16x256xf32>
    %12 = arith.truncf %11 : vector<16x256xf32> to vector<16x256xbf16>
    %c0_2 = arith.constant 0 : index
    %c0_3 = arith.constant 0 : index
    %13 = vector.load %arg3[%c0_2, %c0_3] : memref<256x1152xbf16, #tpu.memory_space<vmem>>, vector<256x1152xbf16>
    %cst = arith.constant dense<0.000000e+00> : vector<16x1152xf32>
    %14 = tpu.matmul %12, %13, %cst {dimension_numbers = #tpu.dot_dimension_numbers<[1], [0], [0], [1], [0, 0, 1, 1], [], []>} : vector<16x256xbf16>, vector<256x1152xbf16>, vector<16x1152xf32> -> vector<16x1152xf32>
    %c0_4 = arith.constant 0 : index
    %c0_5 = arith.constant 0 : index
    %15 = vector.load %arg6[%c0_4, %c0_5] : memref<16x384xf32, #tpu.memory_space<vmem>>, vector<16x384xf32>
    %16 = vector.extract_strided_slice %14 {offsets = [0, 0], sizes = [16, 384], strides = [1, 1]} : vector<16x1152xf32> to vector<16x384xf32>
    %17 = vector.extract_strided_slice %14 {offsets = [0, 384], sizes = [16, 384], strides = [1, 1]} : vector<16x1152xf32> to vector<16x384xf32>
    %18 = arith.addf %16, %17 : vector<16x384xf32>
    %19 = vector.extract_strided_slice %14 {offsets = [0, 768], sizes = [16, 384], strides = [1, 1]} : vector<16x1152xf32> to vector<16x384xf32>
    %20 = arith.addf %18, %19 : vector<16x384xf32>
    %21 = arith.addf %15, %20 : vector<16x384xf32>
    %c0_6 = arith.constant 0 : index
    %c0_7 = arith.constant 0 : index
    %22 = vector.load %arg6[%c0_6, %c0_7] : memref<16x384xf32, #tpu.memory_space<vmem>>, vector<16x384xf32>
    tpu.vector_store %arg6[%c0_6, %c0_7], %21 {strides = array<i32>} : memref<16x384xf32, #tpu.memory_space<vmem>>, vector<16x384xf32>,
    %c0_i32_8 = arith.constant 0 : i32
    %23 = arith.cmpi eq, %arg1, %c0_i32_8 : i32
    %24 = arith.extui %23 : i1 to i32
    %c0_i32_9 = arith.constant 0 : i32
    %25 = arith.cmpi ne, %24, %c0_i32_9 : i32
    scf.if %25 {
      %c0_10 = arith.constant 0 : index
      %c0_11 = arith.constant 0 : index
      %26 = vector.load %arg6[%c0_10, %c0_11] : memref<16x384xf32, #tpu.memory_space<vmem>>, vector<16x384xf32>
      %27 = vector.extract_strided_slice %26 {offsets = [0, 0], sizes = [16, 128], strides = [1, 1]} : vector<16x384xf32> to vector<16x128xf32>
      %28 = vector.extract_strided_slice %26 {offsets = [0, 128], sizes = [16, 128], strides = [1, 1]} : vector<16x384xf32> to vector<16x128xf32>
      %29 = vector.extract_strided_slice %26 {offsets = [0, 256], sizes = [16, 128], strides = [1, 1]} : vector<16x384xf32> to vector<16x128xf32>
      %c16_i32 = arith.constant 16 : i32
      %30 = arith.muli %arg0, %c16_i32 : i32
      %31 = tpu.iota {dimensions = array<i32: 0>} : vector<16x1xi32>
      %32 = vector.broadcast %30 : i32 to vector<16x1xi32>
      %33 = arith.addi %32, %31 : vector<16x1xi32>
      %c8_i32 = arith.constant 8 : i32
      %c0_i32_12 = arith.constant 0 : i32
      %34 = arith.cmpi eq, %c8_i32, %c0_i32_12 : i32
      %c1_i32 = arith.constant 1 : i32
      %35 = arith.select %34, %c1_i32, %c8_i32 : i32
      %36 = vector.broadcast %35 : i32 to vector<16x1xi32>
      %37 = arith.remsi %33, %36 : vector<16x1xi32>
      %c0_i32_13 = arith.constant 0 : i32
      %38 = vector.broadcast %c0_i32_13 : i32 to vector<16x1xi32>
      %39 = arith.cmpi ne, %37, %38 : vector<16x1xi32>
      %c0_i32_14 = arith.constant 0 : i32
      %40 = vector.broadcast %c0_i32_14 : i32 to vector<16x1xi32>
      %41 = arith.cmpi slt, %37, %40 : vector<16x1xi32>
      %c0_i32_15 = arith.constant 0 : i32
      %42 = arith.cmpi slt, %35, %c0_i32_15 : i32
      %43 = vector.broadcast %42 : i1 to vector<16x1xi1>
      %44 = vector.broadcast %43 : vector<16x1xi1> to vector<16x1xi1>
      %45 = arith.xori %41, %44 : vector<16x1xi1>
      %46 = arith.andi %45, %39 : vector<16x1xi1>
      %47 = vector.broadcast %35 : i32 to vector<16x1xi32>
      %48 = arith.addi %37, %47 : vector<16x1xi32>
      %49 = arith.select %46, %48, %37 : vector<16x1xi1>, vector<16x1xi32>
      %c1_i32_16 = arith.constant 1 : i32
      %50 = vector.broadcast %c1_i32_16 : i32 to vector<16x1xi32>
      %51 = arith.addi %49, %50 : vector<16x1xi32>
      %52 = arith.sitofp %51 : vector<16x1xi32> to vector<16x1xf32>
      %53 = vector.broadcast %52 : vector<16x1xf32> to vector<16x128xf32>
      %54 = arith.mulf %53, %28 : vector<16x128xf32>
      %55 = arith.addf %54, %29 : vector<16x128xf32>
      %56 = math.cos %55 : vector<16x128xf32>
      %57 = arith.mulf %27, %56 : vector<16x128xf32>
      %c0_17 = arith.constant 0 : index
      %c0_18 = arith.constant 0 : index
      %58 = vector.load %arg4[%c0_17, %c0_18] : memref<16x128xf32, #tpu.memory_space<vmem>>, vector<16x128xf32>
      tpu.vector_store %arg4[%c0_17, %c0_18], %57 {strides = array<i32>} : memref<16x128xf32, #tpu.memory_space<vmem>>, vector<16x128xf32>,
      %59 = math.sin %55 : vector<16x128xf32>
      %60 = arith.mulf %27, %59 : vector<16x128xf32>
      %c0_19 = arith.constant 0 : index
      %c0_20 = arith.constant 0 : index
      %61 = vector.load %arg5[%c0_19, %c0_20] : memref<16x128xf32, #tpu.memory_space<vmem>>, vector<16x128xf32>
      tpu.vector_store %arg5[%c0_19, %c0_20], %60 {strides = array<i32>} : memref<16x128xf32, #tpu.memory_space<vmem>>, vector<16x128xf32>,
    } else {
    }
    return
  }
  func.func @transform_0(%arg0: i32, %arg1: i32) -> (i32, i32) {
    %c0_i32 = arith.constant 0 : i32
    %c0_i32_0 = arith.constant 0 : i32
    return %arg0, %c0_i32 : i32, i32
  }
  func.func @transform_1(%arg0: i32, %arg1: i32) -> (i32, i32) {
    %c0_i32 = arith.constant 0 : i32
    %c0_i32_0 = arith.constant 0 : i32
    %c0_i32_1 = arith.constant 0 : i32
    return %c0_i32, %c0_i32_0 : i32, i32
  }
  func.func @transform_2(%arg0: i32, %arg1: i32) -> (i32, i32) {
    %c0_i32 = arith.constant 0 : i32
    %c0_i32_0 = arith.constant 0 : i32
    return %arg0, %c0_i32 : i32, i32
  }
  func.func @transform_3(%arg0: i32, %arg1: i32) -> (i32, i32) {
    %c0_i32 = arith.constant 0 : i32
    %c0_i32_0 = arith.constant 0 : i32
    return %arg0, %c0_i32 : i32, i32
  }
}

module attributes {stable_mosaic.version = 11 : i64} {
  func.func @_complex_embedding_kernel(%arg0: i32, %arg1: i32, %arg2: memref<16x1xi32, #tpu.memory_space<vmem>>, %arg3: memref<256x1152xbf16, #tpu.memory_space<vmem>>, %arg4: memref<16x128xf32, #tpu.memory_space<vmem>>, %arg5: memref<16x128xf32, #tpu.memory_space<vmem>>, %arg6: memref<16x384xf32, #tpu.memory_space<vmem>>) attributes {dimension_semantics = [#tpu.dimension_semantics<parallel>, #tpu.dimension_semantics<arbitrary>], iteration_bounds = array<i64: 1, 1>, scalar_prefetch = 0 : i64, scratch_operands = 1 : i64, tpu.core_type = #tpu.core_type<tc>, window_params = [{transform_indices = @transform_0, window_bounds = array<i64: 16, 1>}, {pipeline_mode = #tpu.pipeline_mode<synchronous>, transform_indices = @transform_1, window_bounds = array<i64: 256, 1152>}, {transform_indices = @transform_2, window_bounds = array<i64: 16, 128>}, {transform_indices = @transform_3, window_bounds = array<i64: 16, 128>}]} {
    %c0_i32 = arith.constant 0 : i32
    %0 = arith.cmpi eq, %arg1, %c0_i32 : i32
    %1 = arith.extui %0 : i1 to i32
    %c0_i32_0 = arith.constant 0 : i32
    %2 = arith.cmpi ne, %1, %c0_i32_0 : i32
    scf.if %2 {
      %cst_10 = arith.constant 0.000000e+00 : f32
      %26 = vector.broadcast %cst_10 : f32 to vector<16x384xf32>
      %c0_11 = arith.constant 0 : index
      %c0_12 = arith.constant 0 : index
      %27 = vector.load %arg6[%c0_11, %c0_12] : memref<16x384xf32, #tpu.memory_space<vmem>>, vector<16x384xf32>
      tpu.vector_store %arg6[%c0_11, %c0_12], %26 {strides = array<i32>} : memref<16x384xf32, #tpu.memory_space<vmem>>, vector<16x384xf32>,
    } else {
    }
    %c0 = arith.constant 0 : index
    %c0_1 = arith.constant 0 : index
    %3 = vector.load %arg2[%c0, %c0_1] : memref<16x1xi32, #tpu.memory_space<vmem>>, vector<16x1xi32>
    %c256_i32 = arith.constant 256 : i32
    %4 = arith.muli %arg1, %c256_i32 : i32
    %5 = vector.broadcast %4 : i32 to vector<16x1xi32>
    %6 = arith.subi %3, %5 : vector<16x1xi32>
    %7 = tpu.iota {dimensions = array<i32: 1>} : vector<16x256xi32>
    %8 = vector.broadcast %6 : vector<16x1xi32> to vector<16x256xi32>
    %9 = arith.cmpi eq, %8, %7 : vector<16x256xi32>
    %10 = arith.extui %9 : vector<16x256xi1> to vector<16x256xi32>
    %11 = arith.sitofp %10 : vector<16x256xi32> to vector<16x256xf32>
    %12 = arith.truncf %11 : vector<16x256xf32> to vector<16x256xbf16>
    %c0_2 = arith.constant 0 : index
    %c0_3 = arith.constant 0 : index
    %13 = vector.load %arg3[%c0_2, %c0_3] : memref<256x1152xbf16, #tpu.memory_space<vmem>>, vector<256x1152xbf16>
    %cst = arith.constant dense<0.000000e+00> : vector<16x1152xf32>
    %14 = tpu.matmul %12, %13, %cst {dimension_numbers = #tpu.dot_dimension_numbers<[1], [0], [0], [1], [0, 0, 1, 1], [], []>} : vector<16x256xbf16>, vector<256x1152xbf16>, vector<16x1152xf32> -> vector<16x1152xf32>
    %c0_4 = arith.constant 0 : index
    %c0_5 = arith.constant 0 : index
    %15 = vector.load %arg6[%c0_4, %c0_5] : memref<16x384xf32, #tpu.memory_space<vmem>>, vector<16x384xf32>
    %16 = vector.extract_strided_slice %14 {offsets = [0, 0], sizes = [16, 384], strides = [1, 1]} : vector<16x1152xf32> to vector<16x384xf32>
    %17 = vector.extract_strided_slice %14 {offsets = [0, 384], sizes = [16, 384], strides = [1, 1]} : vector<16x1152xf32> to vector<16x384xf32>
    %18 = arith.addf %16, %17 : vector<16x384xf32>
    %19 = vector.extract_strided_slice %14 {offsets = [0, 768], sizes = [16, 384], strides = [1, 1]} : vector<16x1152xf32> to vector<16x384xf32>
    %20 = arith.addf %18, %19 : vector<16x384xf32>
    %21 = arith.addf %15, %20 : vector<16x384xf32>
    %c0_6 = arith.constant 0 : index
    %c0_7 = arith.constant 0 : index
    %22 = vector.load %arg6[%c0_6, %c0_7] : memref<16x384xf32, #tpu.memory_space<vmem>>, vector<16x384xf32>
    tpu.vector_store %arg6[%c0_6, %c0_7], %21 {strides = array<i32>} : memref<16x384xf32, #tpu.memory_space<vmem>>, vector<16x384xf32>,
    %c0_i32_8 = arith.constant 0 : i32
    %23 = arith.cmpi eq, %arg1, %c0_i32_8 : i32
    %24 = arith.extui %23 : i1 to i32
    %c0_i32_9 = arith.constant 0 : i32
    %25 = arith.cmpi ne, %24, %c0_i32_9 : i32
    scf.if %25 {
      %c0_10 = arith.constant 0 : index
      %c0_11 = arith.constant 0 : index
      %26 = vector.load %arg6[%c0_10, %c0_11] : memref<16x384xf32, #tpu.memory_space<vmem>>, vector<16x384xf32>
      %27 = vector.extract_strided_slice %26 {offsets = [0, 0], sizes = [16, 128], strides = [1, 1]} : vector<16x384xf32> to vector<16x128xf32>
      %28 = vector.extract_strided_slice %26 {offsets = [0, 128], sizes = [16, 128], strides = [1, 1]} : vector<16x384xf32> to vector<16x128xf32>
      %29 = vector.extract_strided_slice %26 {offsets = [0, 256], sizes = [16, 128], strides = [1, 1]} : vector<16x384xf32> to vector<16x128xf32>
      %c16_i32 = arith.constant 16 : i32
      %30 = arith.muli %arg0, %c16_i32 : i32
      %31 = tpu.iota {dimensions = array<i32: 0>} : vector<16x1xi32>
      %32 = vector.broadcast %30 : i32 to vector<16x1xi32>
      %33 = arith.addi %32, %31 : vector<16x1xi32>
      %c8_i32 = arith.constant 8 : i32
      %c0_i32_12 = arith.constant 0 : i32
      %34 = arith.cmpi eq, %c8_i32, %c0_i32_12 : i32
      %c1_i32 = arith.constant 1 : i32
      %35 = arith.select %34, %c1_i32, %c8_i32 : i32
      %36 = vector.broadcast %35 : i32 to vector<16x1xi32>
      %37 = arith.remsi %33, %36 : vector<16x1xi32>
      %c0_i32_13 = arith.constant 0 : i32
      %38 = vector.broadcast %c0_i32_13 : i32 to vector<16x1xi32>
      %39 = arith.cmpi ne, %37, %38 : vector<16x1xi32>
      %c0_i32_14 = arith.constant 0 : i32
      %40 = vector.broadcast %c0_i32_14 : i32 to vector<16x1xi32>
      %41 = arith.cmpi slt, %37, %40 : vector<16x1xi32>
      %c0_i32_15 = arith.constant 0 : i32
      %42 = arith.cmpi slt, %35, %c0_i32_15 : i32
      %43 = vector.broadcast %42 : i1 to vector<16x1xi1>
      %44 = vector.broadcast %43 : vector<16x1xi1> to vector<16x1xi1>
      %45 = arith.xori %41, %44 : vector<16x1xi1>
      %46 = arith.andi %45, %39 : vector<16x1xi1>
      %47 = vector.broadcast %35 : i32 to vector<16x1xi32>
      %48 = arith.addi %37, %47 : vector<16x1xi32>
      %49 = arith.select %46, %48, %37 : vector<16x1xi1>, vector<16x1xi32>
      %c1_i32_16 = arith.constant 1 : i32
      %50 = vector.broadcast %c1_i32_16 : i32 to vector<16x1xi32>
      %51 = arith.addi %49, %50 : vector<16x1xi32>
      %52 = arith.sitofp %51 : vector<16x1xi32> to vector<16x1xf32>
      %53 = vector.broadcast %52 : vector<16x1xf32> to vector<16x128xf32>
      %54 = arith.mulf %53, %28 : vector<16x128xf32>
      %55 = arith.addf %54, %29 : vector<16x128xf32>
      %56 = math.cos %55 : vector<16x128xf32>
      %57 = arith.mulf %27, %56 : vector<16x128xf32>
      %c0_17 = arith.constant 0 : index
      %c0_18 = arith.constant 0 : index
      %58 = vector.load %arg4[%c0_17, %c0_18] : memref<16x128xf32, #tpu.memory_space<vmem>>, vector<16x128xf32>
      tpu.vector_store %arg4[%c0_17, %c0_18], %57 {strides = array<i32>} : memref<16x128xf32, #tpu.memory_space<vmem>>, vector<16x128xf32>,
      %59 = math.sin %55 : vector<16x128xf32>
      %60 = arith.mulf %27, %59 : vector<16x128xf32>
      %c0_19 = arith.constant 0 : index
      %c0_20 = arith.constant 0 : index
      %61 = vector.load %arg5[%c0_19, %c0_20] : memref<16x128xf32, #tpu.memory_space<vmem>>, vector<16x128xf32>
      tpu.vector_store %arg5[%c0_19, %c0_20], %60 {strides = array<i32>} : memref<16x128xf32, #tpu.memory_space<vmem>>, vector<16x128xf32>,
    } else {
    }
    return
  }
  func.func @transform_0(%arg0: i32, %arg1: i32) -> (i32, i32) {
    %c0_i32 = arith.constant 0 : i32
    %c0_i32_0 = arith.constant 0 : i32
    return %arg0, %c0_i32 : i32, i32
  }
  func.func @transform_1(%arg0: i32, %arg1: i32) -> (i32, i32) {
    %c0_i32 = arith.constant 0 : i32
    %c0_i32_0 = arith.constant 0 : i32
    %c0_i32_1 = arith.constant 0 : i32
    return %c0_i32, %c0_i32_0 : i32, i32
  }
  func.func @transform_2(%arg0: i32, %arg1: i32) -> (i32, i32) {
    %c0_i32 = arith.constant 0 : i32
    %c0_i32_0 = arith.constant 0 : i32
    return %arg0, %c0_i32 : i32, i32
  }
  func.func @transform_3(%arg0: i32, %arg1: i32) -> (i32, i32) {
    %c0_i32 = arith.constant 0 : i32
    %c0_i32_0 = arith.constant 0 : i32
    return %arg0, %c0_i32 : i32, i32
  }
}

</mosaic_0001>

<bundles_post_ra>
// kernel: tpu_custom_call.1
= control target key start
LH: loop header
LB: loop body
LE: loop exit
PB: predicated region body
PF: predicated region fallthrough
CT: control target
= control target key end

     0   :  { %9 = vsyncpa [#allocation4], 0  ;;  %s2381_s0 = inlined_call_operand.vmem [shape: s32[16,1], index: 0, kind: input, shape index: {}]   ;;  %s2382_s1 = inlined_call_operand.hbm [shape: bf16[256,1152], index: 1, kind: input, shape index: {}]   ;;  %s2383_s2 = inlined_call_operand.hbm [shape: f32[16,128], index: 2, kind: output, shape index: {0}]   ;;  %s2384_s3 = inlined_call_operand.hbm [shape: f32[16,128], index: 3, kind: output, shape index: {1}]  }
   0x1   :  { %10 = vsyncpa [#allocation5], 0 }
   0x2   :  { %11 = vsyncpa [#allocation8], 0  ;;  %s2223_s12 = smov [#allocation3]  }
   0x3   :  { %s19_s13 = sshll.u32 %s2223_s12, 4  ;;  %s20_s13 = int_to_ptr.vmem [resolvable:$true] %s19_s13 }
   0x4   :  { %s2165_s14 = scalar_lea.vmem %s20_s13, 18432  ;;  %p2170_p1 = scmp.lt.s32.totalorder %s20_s13, %s20_s13 }
   0x5   :  { %p2166_p0 = scmp.ne.s32.totalorder %s20_s13, %s2165_s14  ;;  %p2171_p2 = scmp.lt.s32.totalorder %s2165_s14, %s2165_s14 }
   0x7   :  { %p2172_p3 = por %p2171_p2, %p2170_p1 }
   0x9   :  { %p2173_p4 = pnand %p2172_p3, %p2166_p0 }
   0xb   :  { %2176 = shalt.err (!%p2173_p4)
}
   0xc   :  { %s2224_s15 = smov 576   ;;  %s2225_s16 = smov 36  }
   0xd   :  { %25 = dma.hbm_to_vmem [thread:$0]  %s2382_s1, 18432, %s20_s13, [#allocation4], %s2224_s15, %s2224_s15, %s2225_s16  }
   0xe   :  { %2217 = dma.done.wait [#allocation4], 18432  }
   0xf   :  { %2218 = vsyncadd [#allocation4], 4294948864  ;;  %v2226_v0 = vmov 0   ;;  %v40_v1 = vld [vmem:[%s2381_s0] sm:$0xff]  ;;  %v41_v2 = vld [vmem:[%s2381_s0 + $0x8] sm:$0xff]  ;;  %s2234_s0 = smov [#allocation6]  }
  0x10   :  { %1940 = vset.pattern.permute.xlu0 %v2226_v0  ;;  %v1941_v3 = vld [vmem:[#allocation3 + $0x1fc] ss:$36 sps:$4 sm:$0xff]   ;;  %v1943_v4 = vld [vmem:[#allocation3 + $0x204] ss:$36 sps:$4 sm:$0xff]   ;;  %v1947_v7 = vld [vmem:[#allocation3 + $0x1b4] ss:$36 sps:$4 sm:$0xff]  }
  0x11   :  { %50 = vperm.xlu0 %1940, %v40_v1   ;;  %v1945_v5 = vld [vmem:[#allocation3 + $0x1f8] ss:$36 sps:$4 sm:$0xff]   ;;  %965 = vmatprep.subr.bf16.mxu0 %v1941_v3  ;;  %v1946_v6 = vld [vmem:[#allocation3 + $0x200] ss:$36 sps:$4 sm:$0xff]   ;;  %v1951_v9 = vld [vmem:[#allocation3 + $0x1b0] ss:$36 sps:$4 sm:$0xff]  }
  0x12   :  { %1008 = vmatprep.subr.bf16.mxu1 %v1943_v4  ;;  %966 = vmatpush1.bf16.msra.mxu0 %v1945_v5  ;;  %v1949_v8 = vld [vmem:[#allocation3 + $0x1bc] ss:$36 sps:$4 sm:$0xff]   ;;  %v1953_v11 = vld [vmem:[#allocation3 + $0x16c] ss:$36 sps:$4 sm:$0xff]   ;;  %v1955_v12 = vld [vmem:[#allocation3 + $0x174] ss:$36 sps:$4 sm:$0xff]   ;;  %v46_v5 = vlaneseq }
  0x13   :  { %1009 = vmatpush1.bf16.msra.mxu1 %v1946_v6  ;;  %v1952_v10 = vld [vmem:[#allocation3 + $0x1b8] ss:$36 sps:$4 sm:$0xff]   ;;  %967 = vmatprep.subr.bf16.mxu0 %v1947_v7  ;;  %v1957_v13 = vld [vmem:[#allocation3 + $0x168] ss:$36 sps:$4 sm:$0xff]   ;;  %v1958_v14 = vld [vmem:[#allocation3 + $0x170] ss:$36 sps:$4 sm:$0xff]  }
  0x14   :  { %1010 = vmatprep.subr.bf16.mxu1 %v1949_v8  ;;  %v1959_v15 = vld [vmem:[#allocation3 + $0x124] ss:$36 sps:$4 sm:$0xff]   ;;  %v1961_v16 = vld [vmem:[#allocation3 + $0x12c] ss:$36 sps:$4 sm:$0xff]   ;;  %v1965_v19 = vld [vmem:[#allocation3 + $0xdc] ss:$36 sps:$4 sm:$0xff]  }
  0x15   :  { %53 = vperm.xlu0 %1940, %v41_v2   ;;  %v1963_v17 = vld [vmem:[#allocation3 + $0x120] ss:$36 sps:$4 sm:$0xff]   ;;  %v1964_v18 = vld [vmem:[#allocation3 + $0x128] ss:$36 sps:$4 sm:$0xff]   ;;  %v1969_v21 = vld [vmem:[#allocation3 + $0xd8] ss:$36 sps:$4 sm:$0xff]  }
  0x16   :  { %968 = vmatpush1.bf16.msra.mxu0 %v1951_v9  ;;  %v1967_v20 = vld [vmem:[#allocation3 + $0xe4] ss:$36 sps:$4 sm:$0xff]   ;;  %v1971_v23 = vld [vmem:[#allocation3 + $0x94] ss:$36 sps:$4 sm:$0xff]   ;;  %v1973_v24 = vld [vmem:[#allocation3 + $0x9c] ss:$36 sps:$4 sm:$0xff]  }
  0x17   :  { %1011 = vmatpush1.bf16.msra.mxu1 %v1952_v10  ;;  %969 = vmatprep.subr.bf16.mxu0 %v1953_v11  ;;  %v1970_v22 = vld [vmem:[#allocation3 + $0xe0] ss:$36 sps:$4 sm:$0xff]   ;;  %v1975_v25 = vld [vmem:[#allocation3 + $0x90] ss:$36 sps:$4 sm:$0xff]   ;;  %v1976_v26 = vld [vmem:[#allocation3 + $0x98] ss:$36 sps:$4 sm:$0xff]  }
  0x18   :  { %1012 = vmatprep.subr.bf16.mxu1 %v1955_v12  ;;  %v1977_v27 = vld [vmem:[#allocation3 + $0x4c] ss:$36 sps:$4 sm:$0xff]   ;;  %v1979_v28 = vld [vmem:[#allocation3 + $0x54] ss:$36 sps:$4 sm:$0xff]   ;;  %v1983_v31 = vld [vmem:[#allocation3 + $0x4] ss:$36 sps:$4 sm:$0xff]  }
  0x19   :  { %v1981_v29 = vld [vmem:[#allocation3 + $0x48] ss:$36 sps:$4 sm:$0xff]   ;;  %v1982_v30 = vld [vmem:[#allocation3 + $0x50] ss:$36 sps:$4 sm:$0xff]   ;;  %v1987_v33 = vld [vmem:[#allocation3] ss:$36 sps:$4 sm:$0xff]  }
  0x1a   :  { %970 = vmatpush1.bf16.msra.mxu0 %v1957_v13  ;;  %v1985_v32 = vld [vmem:[#allocation3 + $0xc] ss:$36 sps:$4 sm:$0xff]   ;;  %v1989_v35 = vld [vmem:[#allocation3 + $0x43c] ss:$36 sps:$4 sm:$0xff]   ;;  %v1991_v36 = vld [vmem:[#allocation3 + $0x444] ss:$36 sps:$4 sm:$0xff]  }
  0x1b   :  { %1013 = vmatpush1.bf16.msra.mxu1 %v1958_v14  ;;  %971 = vmatprep.subr.bf16.mxu0 %v1959_v15  ;;  %v1988_v34 = vld [vmem:[#allocation3 + $0x8] ss:$36 sps:$4 sm:$0xff]   ;;  %v1993_v37 = vld [vmem:[#allocation3 + $0x438] ss:$36 sps:$4 sm:$0xff]   ;;  %v1994_v38 = vld [vmem:[#allocation3 + $0x440] ss:$36 sps:$4 sm:$0xff]  }
  0x1c   :  { %1014 = vmatprep.subr.bf16.mxu1 %v1961_v16  ;;  %v1995_v39 = vld [vmem:[#allocation3 + $0x3f4] ss:$36 sps:$4 sm:$0xff]   ;;  %v1997_v40 = vld [vmem:[#allocation3 + $0x3fc] ss:$36 sps:$4 sm:$0xff]   ;;  %v2001_v43 = vld [vmem:[#allocation3 + $0x3ac] ss:$36 sps:$4 sm:$0xff]  }
  0x1d   :  { %v1999_v41 = vld [vmem:[#allocation3 + $0x3f0] ss:$36 sps:$4 sm:$0xff]   ;;  %v2000_v42 = vld [vmem:[#allocation3 + $0x3f8] ss:$36 sps:$4 sm:$0xff]   ;;  %v2005_v45 = vld [vmem:[#allocation3 + $0x3a8] ss:$36 sps:$4 sm:$0xff]  }
  0x1e   :  { %972 = vmatpush1.bf16.msra.mxu0 %v1963_v17  ;;  %v2003_v44 = vld [vmem:[#allocation3 + $0x3b4] ss:$36 sps:$4 sm:$0xff]   ;;  %v2007_v47 = vld [vmem:[#allocation3 + $0x364] ss:$36 sps:$4 sm:$0xff]   ;;  %v2009_v48 = vld [vmem:[#allocation3 + $0x36c] ss:$36 sps:$4 sm:$0xff]  }
  0x1f   :  { %1015 = vmatpush1.bf16.msra.mxu1 %v1964_v18  ;;  %973 = vmatprep.subr.bf16.mxu0 %v1965_v19  ;;  %v2006_v46 = vld [vmem:[#allocation3 + $0x3b0] ss:$36 sps:$4 sm:$0xff]   ;;  %v2011_v49 = vld [vmem:[#allocation3 + $0x360] ss:$36 sps:$4 sm:$0xff]   ;;  %v2012_v50 = vld [vmem:[#allocation3 + $0x368] ss:$36 sps:$4 sm:$0xff]  }
  0x20   :  { %1016 = vmatprep.subr.bf16.mxu1 %v1967_v20  ;;  %v2013_v51 = vld [vmem:[#allocation3 + $0x31c] ss:$36 sps:$4 sm:$0xff]   ;;  %v2015_v52 = vld [vmem:[#allocation3 + $0x324] ss:$36 sps:$4 sm:$0xff]   ;;  %v2019_v55 = vld [vmem:[#allocation3 + $0x2d4] ss:$36 sps:$4 sm:$0xff]  }
  0x21   :  { %v2017_v53 = vld [vmem:[#allocation3 + $0x318] ss:$36 sps:$4 sm:$0xff]   ;;  %v2018_v54 = vld [vmem:[#allocation3 + $0x320] ss:$36 sps:$4 sm:$0xff]   ;;  %v2023_v57 = vld [vmem:[#allocation3 + $0x2d0] ss:$36 sps:$4 sm:$0xff]  }
  0x22   :  { %974 = vmatpush1.bf16.msra.mxu0 %v1969_v21  ;;  %v2021_v56 = vld [vmem:[#allocation3 + $0x2dc] ss:$36 sps:$4 sm:$0xff]   ;;  %v2025_v59 = vld [vmem:[#allocation3 + $0x28c] ss:$36 sps:$4 sm:$0xff]   ;;  %v2027_v60 = vld [vmem:[#allocation3 + $0x294] ss:$36 sps:$4 sm:$0xff]  }
  0x23   :  { %1017 = vmatpush1.bf16.msra.mxu1 %v1970_v22  ;;  %975 = vmatprep.subr.bf16.mxu0 %v1971_v23  ;;  %v2024_v58 = vld [vmem:[#allocation3 + $0x2d8] ss:$36 sps:$4 sm:$0xff]   ;;  %v2029_v61 = vld [vmem:[#allocation3 + $0x288] ss:$36 sps:$4 sm:$0xff]   ;;  %v2030_v62 = vld [vmem:[#allocation3 + $0x290] ss:$36 sps:$4 sm:$0xff]  }
  0x24   :  { %1018 = vmatprep.subr.bf16.mxu1 %v1973_v24  ;;  %v2031_v63 = vld [vmem:[#allocation3 + $0x244] ss:$36 sps:$4 sm:$0xff]   ;;  %v2033_v0 = vld [vmem:[#allocation3 + $0x24c] ss:$36 sps:$4 sm:$0xff]   ;;  %v2042_v4 = vld [vmem:[#allocation3 + $0x214] ss:$36 sps:$4 sm:$0xff]  }
  0x25   :  { %v2035_v1 = vld [vmem:[#allocation3 + $0x240] ss:$36 sps:$4 sm:$0xff]   ;;  %v2036_v2 = vld [vmem:[#allocation3 + $0x248] ss:$36 sps:$4 sm:$0xff]   ;;  %v47_v6 = vand.u32 127, %v46_v5  ;;  %v1219_v13 = vshrl.u32 %v46_v5, 7 }
  0x26   :  { %976 = vmatpush1.bf16.msra.mxu0 %v1975_v25  ;;  %v2039_v3 = vld [vmem:[#allocation3 + $0x20c] ss:$36 sps:$4 sm:$0xff]   ;;  %v2227_v14 = vmov 1.0|1.0   ;;  %v2045_v15 = vld [vmem:[#allocation3 + $0x1c4] ss:$36 sps:$4 sm:$0xff]  }
  0x27   :  { %1019 = vmatpush1.bf16.msra.mxu1 %v1976_v26  ;;  %977 = vmatprep.subr.bf16.mxu0 %v1977_v27  ;;  %v48_v8 = vadd.s32 128, %v47_v6  ;;  %v2037_v10 = vld [vmem:[#allocation3 + $0x208] ss:$36 sps:$4 sm:$0xff]   ;;  %v2040_v11 = vld [vmem:[#allocation3 + $0x210] ss:$36 sps:$4 sm:$0xff]   ;;  %s1683_s1 = sshll.u32 %s2234_s0, 4  ;;  %s1684_s1 = int_to_ptr.vmem [resolvable:$true] %s1683_s1 }
  0x28   :  { %1020 = vmatprep.subr.bf16.mxu1 %v1979_v28  ;;  %v2048_v16 = vld [vmem:[#allocation3 + $0x1cc] ss:$36 sps:$4 sm:$0xff]   ;;  %v2043_v17 = vld [vmem:[#allocation3 + $0x1c0] ss:$36 sps:$4 sm:$0xff]   ;;  %v2049_v21 = vld [vmem:[#allocation3 + $0x178] ss:$36 sps:$4 sm:$0xff]   ;;  %p2182_p6 = scmp.lt.s32.totalorder %s1684_s1, %s1684_s1 }
  0x29   :  { %v2046_v18 = vld [vmem:[#allocation3 + $0x1c8] ss:$36 sps:$4 sm:$0xff]   ;;  %v2051_v19 = vld [vmem:[#allocation3 + $0x17c] ss:$36 sps:$4 sm:$0xff]   ;;  %v2057_v23 = vld [vmem:[#allocation3 + $0x134] ss:$36 sps:$4 sm:$0xff]  }
  0x2a   :  { %978 = vmatpush1.bf16.msra.mxu0 %v1981_v29  ;;  %v2054_v20 = vld [vmem:[#allocation3 + $0x184] ss:$36 sps:$4 sm:$0xff]   ;;  %v2060_v24 = vld [vmem:[#allocation3 + $0x13c] ss:$36 sps:$4 sm:$0xff]   ;;  %v2055_v25 = vld [vmem:[#allocation3 + $0x130] ss:$36 sps:$4 sm:$0xff]  }
  0x2b   :  { %1021 = vmatpush1.bf16.msra.mxu1 %v1982_v30  ;;  %979 = vmatprep.subr.bf16.mxu0 %v1983_v31  ;;  %v2052_v22 = vld [vmem:[#allocation3 + $0x180] ss:$36 sps:$4 sm:$0xff]   ;;  %v2058_v26 = vld [vmem:[#allocation3 + $0x138] ss:$36 sps:$4 sm:$0xff]   ;;  %v2063_v27 = vld [vmem:[#allocation3 + $0xec] ss:$36 sps:$4 sm:$0xff]  }
  0x2c   :  { %1022 = vmatprep.subr.bf16.mxu1 %v1985_v32  ;;  %v2066_v28 = vld [vmem:[#allocation3 + $0xf4] ss:$36 sps:$4 sm:$0xff]   ;;  %v2061_v29 = vld [vmem:[#allocation3 + $0xe8] ss:$36 sps:$4 sm:$0xff]   ;;  %s2235_s23 = smov [#allocation7]   ;;  %s2177_s25 = scalar_lea.vmem %s1684_s1, 256 }
  0x2d   :  { %v2064_v30 = vld [vmem:[#allocation3 + $0xf0] ss:$36 sps:$4 sm:$0xff]   ;;  %v2069_v31 = vld [vmem:[#allocation3 + $0xa4] ss:$36 sps:$4 sm:$0xff]   ;;  %s1695_s24 = sshll.u32 %s2235_s23, 4  ;;  %p2178_p5 = scmp.ne.s32.totalorder %s1684_s1, %s2177_s25  ;;  %s1696_s24 = int_to_ptr.vmem [resolvable:$true] %s1695_s24 }
  0x2e   :  { %980 = vmatpush1.bf16.msra.mxu0 %v1987_v33  ;;  %v2072_v32 = vld [vmem:[#allocation3 + $0xac] ss:$36 sps:$4 sm:$0xff]   ;;  %v2067_v33 = vld [vmem:[#allocation3 + $0xa0] ss:$36 sps:$4 sm:$0xff]   ;;  %p2183_p7 = scmp.lt.s32.totalorder %s2177_s25, %s2177_s25 }
  0x2f   :  { %1023 = vmatpush1.bf16.msra.mxu1 %v1988_v34  ;;  %981 = vmatprep.subr.bf16.mxu0 %v1989_v35  ;;  %v2070_v34 = vld [vmem:[#allocation3 + $0xa8] ss:$36 sps:$4 sm:$0xff]   ;;  %v2075_v35 = vld [vmem:[#allocation3 + $0x5c] ss:$36 sps:$4 sm:$0xff]  }
  0x30   :  { %1024 = vmatprep.subr.bf16.mxu1 %v1991_v36  ;;  %v2078_v36 = vld [vmem:[#allocation3 + $0x64] ss:$36 sps:$4 sm:$0xff]   ;;  %p2184_p8 = por %p2183_p7, %p2182_p6 }
  0x31   :  { %v2145_v12 = vld [vmem:[#allocation3 + $0x2a8] ss:$36 sps:$4 sm:$0xff]  }
  0x32   :  { %982 = vmatpush2.bf16.msra.mxu0 %v1993_v37  ;;  %v2073_v37 = vld [vmem:[#allocation3 + $0x58] ss:$36 sps:$4 sm:$0xff]   ;;  %p2185_p9 = pnand %p2184_p8, %p2178_p5 }
  0x33   :  { %1025 = vmatpush2.bf16.msra.mxu1 %v1994_v38  ;;  %983 = vmatprep.subr.bf16.mxu0 %v1995_v39  ;;  %v2076_v38 = vld [vmem:[#allocation3 + $0x60] ss:$36 sps:$4 sm:$0xff]   ;;  %v2081_v39 = vld [vmem:[#allocation3 + $0x14] ss:$36 sps:$4 sm:$0xff]  }
  0x34   :  { %1026 = vmatprep.subr.bf16.mxu1 %v1997_v40  ;;  %v2084_v40 = vld [vmem:[#allocation3 + $0x1c] ss:$36 sps:$4 sm:$0xff]  }
  0x36   :  { %984 = vmatpush2.bf16.msra.mxu0 %v1999_v41  ;;  %v2079_v41 = vld [vmem:[#allocation3 + $0x10] ss:$36 sps:$4 sm:$0xff]  }
  0x37   :  { %1027 = vmatpush2.bf16.msra.mxu1 %v2000_v42  ;;  %985 = vmatprep.subr.bf16.mxu0 %v2001_v43  ;;  %v2082_v42 = vld [vmem:[#allocation3 + $0x18] ss:$36 sps:$4 sm:$0xff]   ;;  %v2087_v43 = vld [vmem:[#allocation3 + $0x44c] ss:$36 sps:$4 sm:$0xff]  }
  0x38   :  { %1028 = vmatprep.subr.bf16.mxu1 %v2003_v44  ;;  %v2090_v44 = vld [vmem:[#allocation3 + $0x454] ss:$36 sps:$4 sm:$0xff]  }
  0x3a   :  { %986 = vmatpush2.bf16.msra.mxu0 %v2005_v45  ;;  %v2085_v45 = vld [vmem:[#allocation3 + $0x448] ss:$36 sps:$4 sm:$0xff]  }
  0x3b   :  { %1029 = vmatpush2.bf16.msra.mxu1 %v2006_v46  ;;  %987 = vmatprep.subr.bf16.mxu0 %v2007_v47  ;;  %v2088_v46 = vld [vmem:[#allocation3 + $0x450] ss:$36 sps:$4 sm:$0xff]   ;;  %v2093_v47 = vld [vmem:[#allocation3 + $0x404] ss:$36 sps:$4 sm:$0xff]  }
  0x3c   :  { %1030 = vmatprep.subr.bf16.mxu1 %v2009_v48  ;;  %v2096_v48 = vld [vmem:[#allocation3 + $0x40c] ss:$36 sps:$4 sm:$0xff]  }
  0x3e   :  { %988 = vmatpush2.bf16.msra.mxu0 %v2011_v49  ;;  %v2091_v49 = vld [vmem:[#allocation3 + $0x400] ss:$36 sps:$4 sm:$0xff]  }
  0x3f   :  { %1031 = vmatpush2.bf16.msra.mxu1 %v2012_v50  ;;  %989 = vmatprep.subr.bf16.mxu0 %v2013_v51  ;;  %v2094_v50 = vld [vmem:[#allocation3 + $0x408] ss:$36 sps:$4 sm:$0xff]   ;;  %v2099_v51 = vld [vmem:[#allocation3 + $0x3bc] ss:$36 sps:$4 sm:$0xff]  }
  0x40   :  { %1032 = vmatprep.subr.bf16.mxu1 %v2015_v52  ;;  %v2102_v52 = vld [vmem:[#allocation3 + $0x3c4] ss:$36 sps:$4 sm:$0xff]  }
  0x42   :  { %990 = vmatpush2.bf16.msra.mxu0 %v2017_v53  ;;  %v2097_v53 = vld [vmem:[#allocation3 + $0x3b8] ss:$36 sps:$4 sm:$0xff]  }
  0x43   :  { %1033 = vmatpush2.bf16.msra.mxu1 %v2018_v54  ;;  %991 = vmatprep.subr.bf16.mxu0 %v2019_v55  ;;  %v2100_v54 = vld [vmem:[#allocation3 + $0x3c0] ss:$36 sps:$4 sm:$0xff]   ;;  %v2105_v55 = vld [vmem:[#allocation3 + $0x374] ss:$36 sps:$4 sm:$0xff]  }
  0x44   :  { %1034 = vmatprep.subr.bf16.mxu1 %v2021_v56  ;;  %v2108_v56 = vld [vmem:[#allocation3 + $0x37c] ss:$36 sps:$4 sm:$0xff]  }
  0x46   :  { %992 = vmatpush2.bf16.msra.mxu0 %v2023_v57  ;;  %v2103_v57 = vld [vmem:[#allocation3 + $0x370] ss:$36 sps:$4 sm:$0xff]  }
  0x47   :  { %1035 = vmatpush2.bf16.msra.mxu1 %v2024_v58  ;;  %993 = vmatprep.subr.bf16.mxu0 %v2025_v59  ;;  %v2106_v58 = vld [vmem:[#allocation3 + $0x378] ss:$36 sps:$4 sm:$0xff]   ;;  %v2111_v59 = vld [vmem:[#allocation3 + $0x32c] ss:$36 sps:$4 sm:$0xff]  }
  0x48   :  { %1036 = vmatprep.subr.bf16.mxu1 %v2027_v60  ;;  %v2114_v60 = vld [vmem:[#allocation3 + $0x334] ss:$36 sps:$4 sm:$0xff]  }
  0x4a   :  { %994 = vmatpush2.bf16.msra.mxu0 %v2029_v61  ;;  %v2109_v61 = vld [vmem:[#allocation3 + $0x328] ss:$36 sps:$4 sm:$0xff]  }
  0x4b   :  { %1037 = vmatpush2.bf16.msra.mxu1 %v2030_v62  ;;  %995 = vmatprep.subr.bf16.mxu0 %v2031_v63  ;;  %v2112_v62 = vld [vmem:[#allocation3 + $0x330] ss:$36 sps:$4 sm:$0xff]   ;;  %v2117_v63 = vld [vmem:[#allocation3 + $0x2e4] ss:$36 sps:$4 sm:$0xff]  }
  0x4c   :  { %1038 = vmatprep.subr.bf16.mxu1 %v2033_v0  ;;  %v2120_v0 = vld [vmem:[#allocation3 + $0x2ec] ss:$36 sps:$4 sm:$0xff]  }
  0x4e   :  { %996 = vmatpush2.bf16.msra.mxu0 %v2035_v1  ;;  %v2115_v1 = vld [vmem:[#allocation3 + $0x2e0] ss:$36 sps:$4 sm:$0xff]  }
  0x4f   :  { %1039 = vmatpush2.bf16.msra.mxu1 %v2036_v2  ;;  %1051 = vmatprep.subr.bf16.mxu0 %v2039_v3  ;;  %v2118_v2 = vld [vmem:[#allocation3 + $0x2e8] ss:$36 sps:$4 sm:$0xff]   ;;  %v2123_v3 = vld [vmem:[#allocation3 + $0x29c] ss:$36 sps:$4 sm:$0xff]  }
  0x50   :  { %1094 = vmatprep.subr.bf16.mxu1 %v2042_v4  ;;  %v2126_v4 = vld [vmem:[#allocation3 + $0x2a4] ss:$36 sps:$4 sm:$0xff]  }
  0x8c   :  { %v51_v7 = vpop.permute.xlu0 %50 }
  0x8d   :  { %vm56_vm0 = vcmp.eq.s32.totalorder %v51_v7, %v48_v8  ;;  %vm55_vm3 = vcmp.eq.s32.totalorder %v51_v7, %v47_v6  ;;  %v2124_v7 = vld [vmem:[#allocation3 + $0x2a0] ss:$36 sps:$4 sm:$0xff]  }
  0x90   :  { %v54_v9 = vpop.permute.xlu0 %53 }
  0x91   :  { %vm57_vm1 = vcmp.eq.s32.totalorder %v54_v9, %v47_v6  ;;  %vm58_vm2 = vcmp.eq.s32.totalorder %v54_v9, %v48_v8  ;;  %v2121_v6 = vld [vmem:[#allocation3 + $0x298] ss:$36 sps:$4 sm:$0xff]  }
  0x92   :  { %vm2268_vm4 = vmpackc.low %vm58_vm2, %vm56_vm0  ;;  %v2129_v8 = vld [vmem:[#allocation3 + $0x254] ss:$36 sps:$4 sm:$0xff]   ;;  %v2132_v9 = vld [vmem:[#allocation3 + $0x25c] ss:$36 sps:$4 sm:$0xff]  }
  0x93   :  { %vm2272_vm5 = vmpackc.low %vm57_vm1, %vm55_vm3  ;;  %1860 = vmatprep.mubr.msk.bf16.mxu0 %vm2268_vm4, %v2227_v14  ;;  %1864 = vmatprep.mubr.msk.bf16.mxu1 %vm2268_vm4, %v2227_v14 }
  0x94   :  { %1862 = vmatmul.mubr.msk.bf16.vlgmr.msra.gmra.mxu0 %vm2272_vm5, %v2227_v14  ;;  %1866 = vmatmul.mubr.msk.bf16.vlgmr.msra.gmra.mxu1 %vm2272_vm5, %v2227_v14 }
  0x95   :  { %1052 = vmatpush1.bf16.msra.mxu0 %v2037_v10  ;;  %1095 = vmatpush1.bf16.msra.mxu1 %v2040_v11  ;;  %v2127_v10 = vld [vmem:[#allocation3 + $0x250] ss:$36 sps:$4 sm:$0xff]   ;;  %v2130_v11 = vld [vmem:[#allocation3 + $0x258] ss:$36 sps:$4 sm:$0xff]  }
  0x96   :  { %1868 = vmatprep.mubr.msk.bf16.mxu0 %vm2268_vm4, %v2227_v14  ;;  %1872 = vmatprep.mubr.msk.bf16.mxu1 %vm2268_vm4, %v2227_v14 }
  0x97   :  { %1053 = vmatprep.subr.bf16.mxu0 %v2045_v15  ;;  %1096 = vmatprep.subr.bf16.mxu1 %v2048_v16  ;;  %v2133_v15 = vld [vmem:[#allocation3 + $0x458] ss:$36 sps:$4 sm:$0xff]  }
  0x98   :  { %v2134_v16 = vld [vmem:[#allocation3 + $0x218] ss:$36 sps:$4 sm:$0xff]  }
  0x99   :  { %1054 = vmatpush1.bf16.msra.mxu0 %v2043_v17  ;;  %1097 = vmatpush1.bf16.msra.mxu1 %v2046_v18  ;;  %v2135_v17 = vld [vmem:[#allocation3 + $0x410] ss:$36 sps:$4 sm:$0xff]  }
  0x9a   :  { %1055 = vmatprep.subr.bf16.mxu0 %v2051_v19  ;;  %1098 = vmatprep.subr.bf16.mxu1 %v2054_v20  ;;  %v2136_v18 = vld [vmem:[#allocation3 + $0x1d0] ss:$36 sps:$4 sm:$0xff]   ;;  %v2137_v19 = vld [vmem:[#allocation3 + $0x3c8] ss:$36 sps:$4 sm:$0xff]  }
  0x9b   :  { %v2138_v20 = vld [vmem:[#allocation3 + $0x188] ss:$36 sps:$4 sm:$0xff]  }
  0x9d   :  { %1056 = vmatpush1.bf16.msra.mxu0 %v2049_v21  ;;  %1099 = vmatpush1.bf16.msra.mxu1 %v2052_v22  ;;  %v2139_v21 = vld [vmem:[#allocation3 + $0x380] ss:$36 sps:$4 sm:$0xff]  }
  0x9e   :  { %1057 = vmatprep.subr.bf16.mxu0 %v2057_v23  ;;  %1100 = vmatprep.subr.bf16.mxu1 %v2060_v24  ;;  %v2140_v22 = vld [vmem:[#allocation3 + $0x140] ss:$36 sps:$4 sm:$0xff]   ;;  %v2141_v23 = vld [vmem:[#allocation3 + $0x338] ss:$36 sps:$4 sm:$0xff]  }
  0x9f   :  { %v2142_v24 = vld [vmem:[#allocation3 + $0xf8] ss:$36 sps:$4 sm:$0xff]  }
  0xa1   :  { %1058 = vmatpush1.bf16.msra.mxu0 %v2055_v25  ;;  %1101 = vmatpush1.bf16.msra.mxu1 %v2058_v26  ;;  %v2143_v25 = vld [vmem:[#allocation3 + $0x2f0] ss:$36 sps:$4 sm:$0xff]  }
  0xa2   :  { %1059 = vmatprep.subr.bf16.mxu0 %v2063_v27  ;;  %1102 = vmatprep.subr.bf16.mxu1 %v2066_v28  ;;  %v2144_v26 = vld [vmem:[#allocation3 + $0xb0] ss:$36 sps:$4 sm:$0xff]   ;;  %v2146_v27 = vld [vmem:[#allocation3 + $0x68] ss:$36 sps:$4 sm:$0xff]   ;;  %v2147_v28 = vld [vmem:[#allocation3 + $0x260] ss:$36 sps:$4 sm:$0xff]  }
  0xa5   :  { %1060 = vmatpush1.bf16.msra.mxu0 %v2061_v29  ;;  %1103 = vmatpush1.bf16.msra.mxu1 %v2064_v30  ;;  %v2148_v29 = vld [vmem:[#allocation3 + $0x20] ss:$36 sps:$4 sm:$0xff]  }
  0xa6   :  { %1061 = vmatprep.subr.bf16.mxu0 %v2069_v31  ;;  %1104 = vmatprep.subr.bf16.mxu1 %v2072_v32 }
  0xa9   :  { %1062 = vmatpush1.bf16.msra.mxu0 %v2067_v33  ;;  %1105 = vmatpush1.bf16.msra.mxu1 %v2070_v34 }
  0xaa   :  { %1063 = vmatprep.subr.bf16.mxu0 %v2075_v35  ;;  %1106 = vmatprep.subr.bf16.mxu1 %v2078_v36 }
  0xad   :  { %1064 = vmatpush1.bf16.msra.mxu0 %v2073_v37  ;;  %1107 = vmatpush1.bf16.msra.mxu1 %v2076_v38 }
  0xae   :  { %1065 = vmatprep.subr.bf16.mxu0 %v2081_v39  ;;  %1108 = vmatprep.subr.bf16.mxu1 %v2084_v40 }
  0xb1   :  { %1066 = vmatpush1.bf16.msra.mxu0 %v2079_v41  ;;  %1109 = vmatpush1.bf16.msra.mxu1 %v2082_v42 }
  0xb2   :  { %1067 = vmatprep.subr.bf16.mxu0 %v2087_v43  ;;  %1110 = vmatprep.subr.bf16.mxu1 %v2090_v44 }
  0xb5   :  { %1068 = vmatpush2.bf16.msra.mxu0 %v2085_v45  ;;  %1111 = vmatpush2.bf16.msra.mxu1 %v2088_v46  ;;  %v1228_v46 = vand.u32 7, %v1219_v13 }
  0xb6   :  { %1069 = vmatprep.subr.bf16.mxu0 %v2093_v47  ;;  %1112 = vmatprep.subr.bf16.mxu1 %v2096_v48  ;;  %v1220_v47 = vadd.s32 8, %v1219_v13 }
  0xb9   :  { %1070 = vmatpush2.bf16.msra.mxu0 %v2091_v49  ;;  %1113 = vmatpush2.bf16.msra.mxu1 %v2094_v50  ;;  %v1248_v50 = vadd.s32 1, %v1228_v46 }
  0xba   :  { %1071 = vmatprep.subr.bf16.mxu0 %v2099_v51  ;;  %1114 = vmatprep.subr.bf16.mxu1 %v2102_v52  ;;  %v1235_v51 = vand.u32 7, %v1220_v47 }
  0xbd   :  { %1072 = vmatpush2.bf16.msra.mxu0 %v2097_v53  ;;  %1115 = vmatpush2.bf16.msra.mxu1 %v2100_v54 }
  0xbe   :  { %1073 = vmatprep.subr.bf16.mxu0 %v2105_v55  ;;  %1116 = vmatprep.subr.bf16.mxu1 %v2108_v56  ;;  %v1250_v55 = vcvt.s32.f32 %v1248_v50 }
  0xc1   :  { %1074 = vmatpush2.bf16.msra.mxu0 %v2103_v57  ;;  %1117 = vmatpush2.bf16.msra.mxu1 %v2106_v58  ;;  %v1249_v57 = vadd.s32 1, %v1235_v51 }
  0xc2   :  { %1075 = vmatprep.subr.bf16.mxu0 %v2111_v59  ;;  %1118 = vmatprep.subr.bf16.mxu1 %v2114_v60 }
  0xc5   :  { %1076 = vmatpush2.bf16.msra.mxu0 %v2109_v61  ;;  %1119 = vmatpush2.bf16.msra.mxu1 %v2112_v62 }
  0xc6   :  { %1077 = vmatprep.subr.bf16.mxu0 %v2117_v63  ;;  %1120 = vmatprep.subr.bf16.mxu1 %v2120_v0  ;;  %v1251_v0 = vcvt.s32.f32 %v1249_v57 }
  0xc9   :  { %1078 = vmatpush2.bf16.msra.mxu0 %v2115_v1  ;;  %1121 = vmatpush2.bf16.msra.mxu1 %v2118_v2 }
  0xca   :  { %1079 = vmatprep.subr.bf16.mxu0 %v2123_v3  ;;  %1122 = vmatprep.subr.bf16.mxu1 %v2126_v4 }
  0xcd   :  { %1080 = vmatpush2.bf16.msra.mxu0 %v2121_v6  ;;  %1123 = vmatpush2.bf16.msra.mxu1 %v2124_v7 }
  0xce   :  { %1081 = vmatprep.subr.bf16.mxu0 %v2129_v8  ;;  %1124 = vmatprep.subr.bf16.mxu1 %v2132_v9 }
  0xd1   :  { %1082 = vmatpush2.bf16.msra.mxu0 %v2127_v10  ;;  %1125 = vmatpush2.bf16.msra.mxu1 %v2130_v11 }
  0xd2   :  { %1895 = vmatprep.subr.bf16.mxu0 %v2133_v15 }
  0xd4   :  { %1870 = vmatmul.mubr.msk.bf16.vlgmr.msra.gmra.mxu0 %vm2272_vm5, %v2227_v14  ;;  %1874 = vmatmul.mubr.msk.bf16.vlgmr.msra.gmra.mxu1 %vm2272_vm5, %v2227_v14 }
  0xd5   :  { %1896 = vmatpush3.bf16.msra.mxu0 %v2134_v16  ;;  %1876 = vmatprep.mubr.msk.bf16.mxu0 %vm2268_vm4, %v2227_v14 }
  0xd6   :  { %1897 = vmatprep.subr.bf16.mxu0 %v2135_v17 }
  0xd9   :  { %1898 = vmatpush3.bf16.msra.mxu0 %v2136_v18 }
  0xda   :  { %1899 = vmatprep.subr.bf16.mxu0 %v2137_v19 }
  0xdd   :  { %1900 = vmatpush3.bf16.msra.mxu0 %v2138_v20 }
  0xde   :  { %1901 = vmatprep.subr.bf16.mxu0 %v2139_v21 }
  0xe1   :  { %1902 = vmatpush3.bf16.msra.mxu0 %v2140_v22 }
  0xe2   :  { %1903 = vmatprep.subr.bf16.mxu0 %v2141_v23 }
  0xe5   :  { %1904 = vmatpush3.bf16.msra.mxu0 %v2142_v24 }
  0xe6   :  { %1905 = vmatprep.subr.bf16.mxu0 %v2143_v25 }
  0xe9   :  { %1906 = vmatpush3.bf16.msra.mxu0 %v2144_v26 }
  0xea   :  { %1907 = vmatprep.subr.bf16.mxu0 %v2145_v12 }
  0xed   :  { %1908 = vmatpush3.bf16.msra.mxu0 %v2146_v27 }
  0xee   :  { %1909 = vmatprep.subr.bf16.mxu0 %v2147_v28  ;;  %v2228_v28 = vmov 683565275  }
  0xf1   :  { %1910 = vmatpush3.bf16.msra.mxu0 %v2148_v29 }
  0xf4   :  { %1878 = vmatmul.mubr.msk.bf16.vlgmr.msra.gmra.mxu0 %vm2272_vm5, %v2227_v14 }
 0x154   :  { %v999_v30 = vpop.f32.mrf.mxu0  ;;  %v1042_v31 = vpop.f32.mrf.mxu1 }
 0x156   :  { %v1001_v32 = vpop.f32.mrf.mxu0  ;;  %v1044_v33 = vpop.f32.mrf.mxu1 }
 0x157   :  { %v1184_v34 = vadd.f32 %v1044_v33, %v999_v30 }
 0x158   :  { %v1046_v35 = vpop.f32.mrf.mxu1  ;;  %v1003_v36 = vpop.f32.mrf.mxu0 }
 0x15a   :  { %v1048_v37 = vpop.f32.mrf.mxu1  ;;  %v1005_v44 = vpop.f32.mrf.mxu0 }
 0x15b   :  { %v1187_v38 = vadd.f32 %v1048_v37, %v1003_v36  ;;  %v2231_v36 = vmov 2102212464  }
 0x194   :  { %v1128_v39 = vpop.f32.mrf.mxu1  ;;  %v1085_v45 = vpop.f32.mrf.mxu0 }
 0x195   :  { %v2306_v40 = vadd.f32 %v1184_v34, %v1128_v39  ;;  %v1185_v49 = vadd.f32 %v1085_v45, %v1001_v32  ;;  %v2229_v32 = vmov 2475754826   ;;  %v2230_v34 = vmov 2131351028  }
 0x196   :  { %v1130_v41 = vpop.f32.mrf.mxu1  ;;  %v1087_v14 = vpop.f32.mrf.mxu0 }
 0x197   :  { %v1191_v54 = vadd.f32 %v1185_v49, %v1130_v41  ;;  %v1186_v60 = vadd.f32 %v1087_v14, %v1042_v31  ;;  %v2233_v14 = vmov 1326507024  }
 0x198   :  { %v1132_v42 = vpop.f32.mrf.mxu1  ;;  %v1089_v48 = vpop.f32.mrf.mxu0 }
 0x199   :  { %v2308_v43 = vadd.f32 %v1187_v38, %v1132_v42  ;;  %v1188_v56 = vadd.f32 %v1089_v48, %v1005_v44  ;;  %v1252_v63 = vmul.f32 %v1250_v55, %v1191_v54  ;;  %v2232_v38 = vmov 920167782  }
 0x19a   :  { %v1091_v52 = vpop.f32.mrf.mxu0  ;;  %v1134_v58 = vpop.f32.mrf.mxu1 }
 0x19b   :  { %v1194_v5 = vadd.f32 %v1188_v56, %v1134_v58  ;;  %v1189_v3 = vadd.f32 %v1091_v52, %v1046_v35 }
 0x19d   :  { %v1253_v7 = vmul.f32 %v1251_v0, %v1194_v5 }
 0x1b4   :  { %v1911_v53 = vpop.f32.mrf.mxu0 }
 0x1b6   :  { %v1912_v59 = vpop.f32.mrf.mxu0 }
 0x1b7   :  { %v1913_v61 = vadd.f32 %v1912_v59, %v1911_v53 }
 0x1b8   :  { %v1914_v62 = vpop.f32.mrf.mxu0 }
 0x1b9   :  { %v1192_v1 = vadd.f32 %v1913_v61, %v1186_v60 }
 0x1ba   :  { %v1915_v2 = vpop.f32.mrf.mxu0 }
 0x1bb   :  { %v2311_v4 = vadd.f32 %v1252_v63, %v1192_v1  ;;  %v1916_v6 = vadd.f32 %v1915_v2, %v1914_v62 }
 0x1bd   :  { %v1256_v8 = vand.u32 2147483647, %v2311_v4  ;;  %v1259_v9 = vand.u32 2139095040, %v2311_v4  ;;  %v1195_v10 = vadd.f32 %v1916_v6, %v1189_v3  ;;  %vm1258_vm4 = vcmp.lt.s32.totalorder %v2311_v4, 0 }
 0x1bf   :  { %v1260_v11 = vshrl.u32 %v1259_v9, 23  ;;  %v2315_v15 = vadd.f32 %v1253_v7, %v1195_v10  ;;  %v1263_v16 = vand.u32 8388607, %v1256_v8  ;;  %vm1257_vm5 = vcmp.le.f32.partialorder %v1256_v8, 0.7853982 }
 0x1c1   :  { %v1879_v17 = vadd.s32 4294967169, %v1260_v11  ;;  %v1362_v18 = vand.u32 2139095040, %v2315_v15  ;;  %v1264_v20 = vor.u32 8388608, %v1263_v16  ;;  %v1359_v22 = vand.u32 2147483647, %v2315_v15 }
 0x1c3   :  { %v1266_v19 = vadd.s32 1, %v1879_v17  ;;  %v1363_v21 = vshrl.u32 %v1362_v18, 23  ;;  %v2321_v12 = vshll.u32 %v1264_v20, 8  ;;  %v1366_v30 = vand.u32 8388607, %v1359_v22 }
 0x1c5   :  { %vm1267_vm6 = vcmp.gt.s32.totalorder %v1266_v19, 0  ;;  %v1883_v24 = vadd.s32 4294967169, %v1363_v21  ;;  %v1367_v60 = vor.u32 8388608, %v1366_v30 }
 0x1c6   :  { %v1268_v23 = vsel %vm1267_vm6, %v1266_v19, 0  ;;  %vm1361_vm6 = vcmp.lt.s32.totalorder %v2315_v15, 0 }
 0x1c7   :  { %v1269_v25 = vshrl.u32 %v1268_v23, 5  ;;  %v1270_v26 = vand.u32 31, %v1268_v23  ;;  %v1369_v31 = vadd.s32 1, %v1883_v24  ;;  %v1407_v11 = vshll.u32 %v1367_v60, 8 }
 0x1c9   :  { %v1271_v27 = vsub.s32 32, %v1270_v26  ;;  %v1273_v29 = vshll.u32 %v2228_v28, %v1270_v26  ;;  %v1276_v33 = vshll.u32 %v2229_v32, %v1270_v26  ;;  %v1279_v35 = vshll.u32 %v2230_v34, %v1270_v26 }
 0x1ca   :  { %v1282_v37 = vshll.u32 %v2231_v36, %v1270_v26  ;;  %v1285_v39 = vshll.u32 %v2232_v38, %v1270_v26  ;;  %vm1288_vm7 = vcmp.lt.s32.totalorder %v1269_v25, 1  ;;  %vm1290_vm8 = vcmp.lt.s32.totalorder %v1269_v25, 3 }
 0x1cb   :  { %v1274_v41 = vshrl.u32 %v2229_v32, %v1271_v27  ;;  %v1277_v42 = vshrl.u32 %v2230_v34, %v1271_v27  ;;  %v1280_v44 = vshrl.u32 %v2231_v36, %v1271_v27  ;;  %v1272_v45 = vshrl.u32 %v2228_v28, %v1271_v27 }
 0x1cc   :  { %v1283_v13 = vshrl.u32 %v2232_v38, %v1271_v27  ;;  %v1286_v46 = vshrl.u32 %v2233_v14, %v1271_v27  ;;  %vm1370_vm9 = vcmp.gt.s32.totalorder %v1369_v31, 0  ;;  %vm1291_vm10 = vcmp.lt.s32.totalorder %v1269_v25, 4 }
 0x1cd   :  { %v1275_v47 = vor.u32 %v1274_v41, %v1273_v29  ;;  %v1278_v48 = vor.u32 %v1277_v42, %v1276_v33  ;;  %v1281_v49 = vor.u32 %v1280_v44, %v1279_v35  ;;  %v1371_v52 = vsel %vm1370_vm9, %v1369_v31, 0 }
 0x1ce   :  { %v1284_v50 = vor.u32 %v1283_v13, %v1282_v37  ;;  %v1287_v51 = vor.u32 %v1286_v46, %v1285_v39  ;;  %vm1289_vm11 = vcmp.lt.s32.totalorder %v1269_v25, 2  ;;  %v1373_v63 = vand.u32 31, %v1371_v52 }
 0x1cf   :  { %v1292_v53 = vsel %vm1288_vm7, %v1272_v45, %v1275_v47  ;;  %v1293_v54 = vsel %vm1291_vm10, %v1281_v49, 2102212464  ;;  %v1296_v55 = vsel %vm1288_vm7, %v1275_v47, %v1278_v48  ;;  %v1300_v56 = vsel %vm1288_vm7, %v1278_v48, %v1281_v49 }
 0x1d0   :  { %v1294_v57 = vsel %vm1290_vm8, %v1278_v48, %v1293_v54  ;;  %v1297_v58 = vsel %vm1291_vm10, %v1284_v50, 920167782  ;;  %v1301_v59 = vsel %vm1291_vm10, %v1287_v51, 1326507024  ;;  %v1372_v9 = vshrl.u32 %v1371_v52, 5 }
 0x1d1   :  { %v1298_v61 = vsel %vm1290_vm8, %v1281_v49, %v1297_v58  ;;  %v1302_v62 = vsel %vm1290_vm8, %v1284_v50, %v1301_v59  ;;  %v1295_v5 = vsel %vm1289_vm11, %v1292_v53, %v1294_v57  ;;  %v1374_v10 = vsub.s32 32, %v1373_v63 }
 0x1d2   :  { %v1299_v0 = vsel %vm1289_vm11, %v1296_v55, %v1298_v61  ;;  %v1303_v1 = vsel %vm1289_vm11, %v1300_v56, %v1302_v62  ;;  %v1311_v16 = vmul.u32 %v2321_v12, %v1295_v5  ;;  %v1376_v17 = vshll.u32 %v2228_v28, %v1373_v63 }
 0x1d3   :  { %v2334_v2 = vmul.u32.u64.low %v2321_v12, %v1303_v1  ;;  %v2335_v3 = vmul.u32.u64.high %v2321_v12, %v1303_v1, %v2334_v2  ;;  %v2338_v6 = vmul.u32.u64.low %v2321_v12, %v1299_v0  ;;  %v2339_v7 = vmul.u32.u64.high %v2321_v12, %v1299_v0, %v2338_v6 }
 0x1d4   :  { %v1379_v18 = vshll.u32 %v2229_v32, %v1373_v63  ;;  %v1382_v19 = vshll.u32 %v2230_v34, %v1373_v63  ;;  %v1377_v20 = vshrl.u32 %v2229_v32, %v1374_v10  ;;  %v1380_v21 = vshrl.u32 %v2230_v34, %v1374_v10 }
 0x1d5   :  { %v1383_v23 = vshrl.u32 %v2231_v36, %v1374_v10  ;;  %v1385_v24 = vshll.u32 %v2231_v36, %v1373_v63  ;;  %vm1313_vm12 = vc.u32 %v2335_v3, %v2338_v6  ;;  %v1314_v25 = vadd.s32 1, %v2339_v7 }
 0x1d6   :  { %v1386_v26 = vshrl.u32 %v2232_v38, %v1374_v10  ;;  %v1388_v27 = vshll.u32 %v2232_v38, %v1373_v63  ;;  %v1378_v29 = vor.u32 %v1377_v20, %v1376_v17  ;;  %v1381_v30 = vor.u32 %v1380_v21, %v1379_v18 }
 0x1d7   :  { %v1384_v31 = vor.u32 %v1383_v23, %v1382_v19  ;;  %v1389_v33 = vshrl.u32 %v2233_v14, %v1374_v10  ;;  %v1315_v12 = vsel %vm1313_vm12, %v1314_v25, %v2339_v7  ;;  %vm1391_vm13 = vcmp.lt.s32.totalorder %v1372_v9, 1 }
 0x1d8   :  { %v1387_v35 = vor.u32 %v1386_v26, %v1385_v24  ;;  %vm1394_vm14 = vcmp.lt.s32.totalorder %v1372_v9, 4  ;;  %v1316_v32 = vadd.s32 %v1315_v12, %v1311_v16  ;;  %vm1393_vm15 = vcmp.lt.s32.totalorder %v1372_v9, 3 }
 0x1d9   :  { %v1390_v34 = vor.u32 %v1389_v33, %v1388_v27  ;;  %v1396_v36 = vsel %vm1394_vm14, %v1384_v31, 2102212464  ;;  %v1375_v37 = vshrl.u32 %v2228_v28, %v1374_v10  ;;  %v1399_v39 = vsel %vm1391_vm13, %v1378_v29, %v1381_v30 }
 0x1da   :  { %v1400_v41 = vsel %vm1394_vm14, %v1387_v35, 920167782  ;;  %v1403_v42 = vsel %vm1391_vm13, %v1381_v30, %v1384_v31  ;;  %v1317_v44 = vadd.s32 536870912, %v1316_v32  ;;  %vm1392_vm0 = vcmp.lt.s32.totalorder %v1372_v9, 2 }
 0x1db   :  { %v1401_v38 = vsel %vm1393_vm15, %v1384_v31, %v1400_v41  ;;  %v1404_v45 = vsel %vm1394_vm14, %v1390_v34, 1326507024  ;;  %v1395_v13 = vsel %vm1391_vm13, %v1375_v37, %v1378_v29  ;;  %v1397_v14 = vsel %vm1393_vm15, %v1381_v30, %v1396_v36 }
 0x1dc   :  { %v1402_v46 = vsel %vm1392_vm0, %v1399_v39, %v1401_v38  ;;  %v1405_v47 = vsel %vm1393_vm15, %v1387_v35, %v1404_v45  ;;  %v1318_v48 = vshrl.u32 %v1317_v44, 30  ;;  %v1398_v54 = vsel %vm1392_vm0, %v1395_v13, %v1397_v14 }
 0x1dd   :  { %v1406_v49 = vsel %vm1392_vm0, %v1403_v42, %v1405_v47  ;;  %v2349_v50 = vmul.u32.u64.low %v1407_v11, %v1402_v46  ;;  %v2350_v51 = vmul.u32.u64.high %v1407_v11, %v1402_v46, %v2349_v50  ;;  %v1414_v57 = vmul.u32 %v1407_v11, %v1398_v54 }
 0x1de   :  { %v2352_v52 = vmul.u32.u64.low %v1407_v11, %v1406_v49  ;;  %v2353_v53 = vmul.u32.u64.high %v1407_v11, %v1406_v49, %v2352_v52  ;;  %v1319_v28 = vshll.u32 %v1318_v48, 30  ;;  %v1312_v9 = vadd.s32 %v2338_v6, %v2335_v3 }
 0x1df   :  { %v1417_v56 = vadd.s32 1, %v2350_v51  ;;  %v1342_v35 = vsub.s32 4, %v1318_v48  ;;  %vm1360_vm7 = vcmp.le.f32.partialorder %v1359_v22, 0.7853982  ;;  %vm1348_vm14 = vweird.f32 %v2311_v4 }
 0x1e0   :  { %v1320_v55 = vsub.s32 %v1316_v32, %v1319_v28  ;;  %vm1416_vm1 = vc.u32 %v2353_v53, %v2349_v50  ;;  %v1415_v33 = vadd.s32 %v2349_v50, %v2353_v53 }
 0x1e1   :  { %v1418_v59 = vsel %vm1416_vm1, %v1417_v56, %v2350_v51  ;;  %v1343_v44 = vsel %vm1258_vm4, %v1342_v35, %v1318_v48 }
 0x1e2   :  { %v1322_v58 = vsub.s32 0, %v1320_v55  ;;  %v1419_v60 = vadd.s32 %v1418_v59, %v1414_v57  ;;  %v1345_v14 = vsel %vm1257_vm5, 0, %v1343_v44 }
 0x1e3   :  { %v1559_v49 = vadd.s32 3, %v1345_v14  ;;  %v1349_v52 = vand.u32 3, %v1345_v14 }
 0x1e4   :  { %v1880_v61 = vmin.u32 %v1322_v58, %v1320_v55  ;;  %v1420_v62 = vadd.s32 536870912, %v1419_v60 }
 0x1e5   :  { %v1560_v48 = vand.u32 3, %v1559_v49  ;;  %vm1354_vm8 = vcmp.eq.s32.totalorder %v1349_v52, 2  ;;  %vm1351_vm10 = vcmp.eq.s32.totalorder %v1349_v52, 0  ;;  %vm1350_vm12 = vcmp.lt.s32.totalorder %v1349_v52, 2 }
 0x1e6   :  { %v1324_v63 = vclz %v1880_v61  ;;  %v1421_v5 = vshrl.u32 %v1420_v62, 30 }
 0x1e7   :  { %vm1565_vm9 = vcmp.eq.s32.totalorder %v1560_v48, 2  ;;  %vm1562_vm11 = vcmp.eq.s32.totalorder %v1560_v48, 0  ;;  %vm1561_vm13 = vcmp.lt.s32.totalorder %v1560_v48, 2 }
 0x1e8   :  { %v1881_v0 = vadd.s32 4294967294, %v1324_v63  ;;  %v1422_v1 = vshll.u32 %v1421_v5, 30  ;;  %v1445_v50 = vsub.s32 4, %v1421_v5 }
 0x1ea   :  { %vm1882_vm2 = vcmp.lt.s32.totalorder %v1881_v0, 0  ;;  %v1423_v7 = vsub.s32 %v1419_v60, %v1422_v1  ;;  %v1446_v53 = vsel %vm1361_vm6, %v1445_v50, %v1421_v5 }
 0x1eb   :  { %v1327_v2 = vsel %vm1882_vm2, 0, %v1881_v0  ;;  %v1448_v56 = vsel %vm1360_vm7, 0, %v1446_v53 }
 0x1ec   :  { %v1328_v10 = vsub.s32 32, %v1327_v2  ;;  %v1332_v11 = vsub.s32 4294967266, %v1327_v2  ;;  %v1425_v16 = vsub.s32 0, %v1423_v7  ;;  %v1329_v17 = vshll.u32 %v1320_v55, %v1327_v2 }
 0x1ed   :  { %v1663_v63 = vadd.s32 3, %v1448_v56 }
 0x1ee   :  { %v1330_v18 = vshrl.u32 %v1312_v9, %v1328_v10  ;;  %v1333_v19 = vadd.s32 127, %v1332_v11  ;;  %v1884_v20 = vmin.u32 %v1425_v16, %v1423_v7 }
 0x1ef   :  { %v1664_v9 = vand.u32 3, %v1663_v63 }
 0x1f0   :  { %v1331_v21 = vor.u32 %v1330_v18, %v1329_v17  ;;  %v1334_v23 = vshll.u32 %v1333_v19, 23  ;;  %v1427_v24 = vclz %v1884_v20 }
 0x1f1   :  { %vm1669_vm0 = vcmp.eq.s32.totalorder %v1664_v9, 2  ;;  %vm1666_vm2 = vcmp.eq.s32.totalorder %v1664_v9, 0 }
 0x1f2   :  { %v1335_v25 = vor.u32 4788187, %v1334_v23  ;;  %v1885_v26 = vadd.s32 4294967294, %v1427_v24  ;;  %v1338_v29 = vcvt.s32.f32 %v1331_v21 }
 0x1f4   :  { %v1336_v27 = vand.u32 2147483647, %v1335_v25  ;;  %vm1886_vm3 = vcmp.lt.s32.totalorder %v1885_v26, 0 }
 0x1f5   :  { %v1430_v31 = vsel %vm1886_vm3, 0, %v1885_v26 }
 0x1f6   :  { %v1339_v30 = vmul.f32 %v1338_v29, %v1336_v27  ;;  %v1431_v3 = vsub.s32 32, %v1430_v31  ;;  %v1435_v6 = vsub.s32 4294967266, %v1430_v31  ;;  %v1432_v32 = vshll.u32 %v1423_v7, %v1430_v31 }
 0x1f7   :  { %v1452_v7 = vand.u32 3, %v1448_v56 }
 0x1f8   :  { %v1340_v12 = vxor.u32 2147483648, %v1339_v30  ;;  %v1433_v34 = vshrl.u32 %v1415_v33, %v1431_v3  ;;  %v1436_v36 = vadd.s32 127, %v1435_v6 }
 0x1f9   :  { %vm1457_vm15 = vcmp.eq.s32.totalorder %v1452_v7, 2  ;;  %vm1454_vm1 = vcmp.eq.s32.totalorder %v1452_v7, 0  ;;  %vm1453_vm3 = vcmp.lt.s32.totalorder %v1452_v7, 2 }
 0x1fa   :  { %v1341_v37 = vsel %vm1258_vm4, %v1340_v12, %v1339_v30  ;;  %v1434_v41 = vor.u32 %v1433_v34, %v1432_v32  ;;  %v1437_v42 = vshll.u32 %v1436_v36, 23  ;;  %vm1665_vm4 = vcmp.lt.s32.totalorder %v1664_v9, 2 }
 0x1fb   :  { %v1344_v39 = vsel %vm1257_vm5, %v2311_v4, %v1341_v37  ;;  %vm1451_vm5 = vweird.f32 %v2315_v15 }
 0x1fc   :  { %2149 = vcosq.f32 %v1344_v39  ;;  %v1438_v38 = vor.u32 4788187, %v1437_v42  ;;  %v1441_v13 = vcvt.s32.f32 %v1434_v41 }
 0x1fd   :  { %2151 = vsinq.f32 %v1344_v39 }
 0x1fe   :  { %v1439_v45 = vand.u32 2147483647, %v1438_v38 }
 0x200   :  { %v1442_v46 = vmul.f32 %v1441_v13, %v1439_v45 }
 0x202   :  { %v1443_v47 = vxor.u32 2147483648, %v1442_v46 }
 0x204   :  { %v1444_v8 = vsel %vm1361_vm6, %v1443_v47, %v1442_v46 }
 0x205   :  { %v1447_v51 = vsel %vm1360_vm7, %v2315_v15, %v1444_v8 }
 0x206   :  { %2153 = vcosq.f32 %v1447_v51 }
 0x207   :  { %2155 = vsinq.f32 %v1447_v51 }
 0x209   :  { %v2150_v28 = vpop.eup %2149 }
 0x20a   :  { %v2152_v54 = vpop.eup %2151  ;;  %v1355_v55 = vxor.u32 2147483648, %v2150_v28 }
 0x20b   :  { %v1352_v57 = vxor.u32 2147483648, %v2152_v54 }
 0x20c   :  { %v1356_v58 = vsel %vm1354_vm8, %v1355_v55, %v2152_v54  ;;  %v1567_v59 = vsel %vm1565_vm9, %v1355_v55, %v2152_v54 }
 0x20d   :  { %v1353_v22 = vsel %vm1351_vm10, %v2150_v28, %v1352_v57  ;;  %v1564_v60 = vsel %vm1562_vm11, %v2150_v28, %v1352_v57 }
 0x20e   :  { %v1357_v61 = vsel %vm1350_vm12, %v1353_v22, %v1356_v58  ;;  %v1568_v62 = vsel %vm1561_vm13, %v1564_v60, %v1567_v59 }
 0x20f   :  { %v1358_v5 = vsel %vm1348_vm14, nan, %v1357_v61  ;;  %v1569_v0 = vsel %vm1348_vm14, nan, %v1568_v62 }
 0x210   :  { %v1462_v1 = vmul.f32 %v1358_v5, %v2306_v40  ;;  %v1674_v2 = vmul.f32 %v1569_v0, %v2306_v40 }
 0x212   :  { %1464 = vst [vmem:[#allocation6] sm:$0xff] %v1462_v1  ;;  %1676 = vst [vmem:[#allocation7] sm:$0xff] %v1674_v2 }
 0x213   :  { %v2154_v10 = vpop.eup %2153 }
 0x214   :  { %v2156_v11 = vpop.eup %2155  ;;  %v1458_v16 = vxor.u32 2147483648, %v2154_v10 }
 0x215   :  { %v1455_v17 = vxor.u32 2147483648, %v2156_v11 }
 0x216   :  { %v1459_v4 = vsel %vm1457_vm15, %v1458_v16, %v2156_v11  ;;  %v1671_v18 = vsel %vm1669_vm0, %v1458_v16, %v2156_v11 }
 0x217   :  { %v1456_v19 = vsel %vm1454_vm1, %v2154_v10, %v1455_v17  ;;  %v1668_v40 = vsel %vm1666_vm2, %v2154_v10, %v1455_v17 }
 0x218   :  { %v1460_v20 = vsel %vm1453_vm3, %v1456_v19, %v1459_v4  ;;  %v1672_v21 = vsel %vm1665_vm4, %v1668_v40, %v1671_v18 }
 0x219   :  { %v1461_v23 = vsel %vm1451_vm5, nan, %v1460_v20  ;;  %v1673_v24 = vsel %vm1451_vm5, nan, %v1672_v21 }
 0x21a   :  { %v1463_v25 = vmul.f32 %v1461_v23, %v2308_v43  ;;  %v1675_v26 = vmul.f32 %v1673_v24, %v2308_v43 }
 0x21c   :  { %1465 = vst [vmem:[#allocation6 + $0x8] sm:$0xff] %v1463_v25  ;;  %1677 = vst [vmem:[#allocation7 + $0x8] sm:$0xff] %v1675_v26 }
 0x21d   :  { %2188 = shalt.err (!%p2185_p9)
}
 0x21e   :  { %s2236_s26 = smov 128   ;;  %s2237_s27 = smov 8  }
 0x21f   :  { %1689 = dma.vmem_to_hbm [thread:$0]  %s1684_s1, 256, %s2383_s2, [#allocation5], %s2236_s26, %s2236_s26, %s2237_s27  }
 0x220   :  { %s2197_s30 = scalar_lea.vmem %s1696_s24, 256  ;;  %p2202_p11 = scmp.lt.s32.totalorder %s1696_s24, %s1696_s24 }
 0x221   :  { %p2198_p10 = scmp.ne.s32.totalorder %s1696_s24, %s2197_s30  ;;  %p2203_p12 = scmp.lt.s32.totalorder %s2197_s30, %s2197_s30 }
 0x223   :  { %p2204_p13 = por %p2203_p12, %p2202_p11 }
 0x225   :  { %p2205_p0 = pnand %p2204_p13, %p2198_p10 }
 0x227   :  { %2208 = shalt.err (!%p2205_p0)
}
 0x228   :  { %1701 = dma.vmem_to_hbm [thread:$0]  %s1696_s24, 256, %s2384_s3, [#allocation8], %s2236_s26, %s2236_s26, %s2237_s27  }
 0x229   :  { %2219 = dma.done.wait [#allocation5], 256  }
 0x22a   :  { %2220 = vsyncadd [#allocation5], 4294967040 }
 0x22b   :  { %2221 = dma.done.wait [#allocation8], 256  }
 0x22c   :  { %2222 = vsyncadd [#allocation8], 4294967040 }
 0x22d   :  { %1708 = vsyncpa [#allocation4], 1 }
 0x22e   :  { %1709 = vsyncpa [#allocation5], 1 }
 0x22f   :  { %1710 = vsyncpa [#allocation8], 1 }

// kernel: tpu_custom_call.1
= control target key start
LH: loop header
LB: loop body
LE: loop exit
PB: predicated region body
PF: predicated region fallthrough
CT: control target
= control target key end

     0   :  { %9 = vsyncpa [#allocation4], 0  ;;  %s2381_s0 = inlined_call_operand.vmem [shape: s32[16,1], index: 0, kind: input, shape index: {}]   ;;  %s2382_s1 = inlined_call_operand.hbm [shape: bf16[256,1152], index: 1, kind: input, shape index: {}]   ;;  %s2383_s2 = inlined_call_operand.hbm [shape: f32[16,128], index: 2, kind: output, shape index: {0}]   ;;  %s2384_s3 = inlined_call_operand.hbm [shape: f32[16,128], index: 3, kind: output, shape index: {1}]  }
   0x1   :  { %10 = vsyncpa [#allocation5], 0 }
   0x2   :  { %11 = vsyncpa [#allocation8], 0  ;;  %s2223_s12 = smov [#allocation3]  }
   0x3   :  { %s19_s13 = sshll.u32 %s2223_s12, 4  ;;  %s20_s13 = int_to_ptr.vmem [resolvable:$true] %s19_s13 }
   0x4   :  { %s2165_s14 = scalar_lea.vmem %s20_s13, 18432  ;;  %p2170_p1 = scmp.lt.s32.totalorder %s20_s13, %s20_s13 }
   0x5   :  { %p2166_p0 = scmp.ne.s32.totalorder %s20_s13, %s2165_s14  ;;  %p2171_p2 = scmp.lt.s32.totalorder %s2165_s14, %s2165_s14 }
   0x7   :  { %p2172_p3 = por %p2171_p2, %p2170_p1 }
   0x9   :  { %p2173_p4 = pnand %p2172_p3, %p2166_p0 }
   0xb   :  { %2176 = shalt.err (!%p2173_p4)
}
   0xc   :  { %s2224_s15 = smov 576   ;;  %s2225_s16 = smov 36  }
   0xd   :  { %25 = dma.hbm_to_vmem [thread:$0]  %s2382_s1, 18432, %s20_s13, [#allocation4], %s2224_s15, %s2224_s15, %s2225_s16  }
   0xe   :  { %2217 = dma.done.wait [#allocation4], 18432  }
   0xf   :  { %2218 = vsyncadd [#allocation4], 4294948864  ;;  %v2226_v0 = vmov 0   ;;  %v40_v1 = vld [vmem:[%s2381_s0] sm:$0xff]  ;;  %v41_v2 = vld [vmem:[%s2381_s0 + $0x8] sm:$0xff]  ;;  %s2234_s0 = smov [#allocation6]  }
  0x10   :  { %1940 = vset.pattern.permute.xlu0 %v2226_v0  ;;  %v1941_v3 = vld [vmem:[#allocation3 + $0x1fc] ss:$36 sps:$4 sm:$0xff]   ;;  %v1943_v4 = vld [vmem:[#allocation3 + $0x204] ss:$36 sps:$4 sm:$0xff]   ;;  %v1947_v7 = vld [vmem:[#allocation3 + $0x1b4] ss:$36 sps:$4 sm:$0xff]  }
  0x11   :  { %50 = vperm.xlu0 %1940, %v40_v1   ;;  %v1945_v5 = vld [vmem:[#allocation3 + $0x1f8] ss:$36 sps:$4 sm:$0xff]   ;;  %965 = vmatprep.subr.bf16.mxu0 %v1941_v3  ;;  %v1946_v6 = vld [vmem:[#allocation3 + $0x200] ss:$36 sps:$4 sm:$0xff]   ;;  %v1951_v9 = vld [vmem:[#allocation3 + $0x1b0] ss:$36 sps:$4 sm:$0xff]  }
  0x12   :  { %1008 = vmatprep.subr.bf16.mxu1 %v1943_v4  ;;  %966 = vmatpush1.bf16.msra.mxu0 %v1945_v5  ;;  %v1949_v8 = vld [vmem:[#allocation3 + $0x1bc] ss:$36 sps:$4 sm:$0xff]   ;;  %v1953_v11 = vld [vmem:[#allocation3 + $0x16c] ss:$36 sps:$4 sm:$0xff]   ;;  %v1955_v12 = vld [vmem:[#allocation3 + $0x174] ss:$36 sps:$4 sm:$0xff]   ;;  %v46_v5 = vlaneseq }
  0x13   :  { %1009 = vmatpush1.bf16.msra.mxu1 %v1946_v6  ;;  %v1952_v10 = vld [vmem:[#allocation3 + $0x1b8] ss:$36 sps:$4 sm:$0xff]   ;;  %967 = vmatprep.subr.bf16.mxu0 %v1947_v7  ;;  %v1957_v13 = vld [vmem:[#allocation3 + $0x168] ss:$36 sps:$4 sm:$0xff]   ;;  %v1958_v14 = vld [vmem:[#allocation3 + $0x170] ss:$36 sps:$4 sm:$0xff]  }
  0x14   :  { %1010 = vmatprep.subr.bf16.mxu1 %v1949_v8  ;;  %v1959_v15 = vld [vmem:[#allocation3 + $0x124] ss:$36 sps:$4 sm:$0xff]   ;;  %v1961_v16 = vld [vmem:[#allocation3 + $0x12c] ss:$36 sps:$4 sm:$0xff]   ;;  %v1965_v19 = vld [vmem:[#allocation3 + $0xdc] ss:$36 sps:$4 sm:$0xff]  }
  0x15   :  { %53 = vperm.xlu0 %1940, %v41_v2   ;;  %v1963_v17 = vld [vmem:[#allocation3 + $0x120] ss:$36 sps:$4 sm:$0xff]   ;;  %v1964_v18 = vld [vmem:[#allocation3 + $0x128] ss:$36 sps:$4 sm:$0xff]   ;;  %v1969_v21 = vld [vmem:[#allocation3 + $0xd8] ss:$36 sps:$4 sm:$0xff]  }
  0x16   :  { %968 = vmatpush1.bf16.msra.mxu0 %v1951_v9  ;;  %v1967_v20 = vld [vmem:[#allocation3 + $0xe4] ss:$36 sps:$4 sm:$0xff]   ;;  %v1971_v23 = vld [vmem:[#allocation3 + $0x94] ss:$36 sps:$4 sm:$0xff]   ;;  %v1973_v24 = vld [vmem:[#allocation3 + $0x9c] ss:$36 sps:$4 sm:$0xff]  }
  0x17   :  { %1011 = vmatpush1.bf16.msra.mxu1 %v1952_v10  ;;  %969 = vmatprep.subr.bf16.mxu0 %v1953_v11  ;;  %v1970_v22 = vld [vmem:[#allocation3 + $0xe0] ss:$36 sps:$4 sm:$0xff]   ;;  %v1975_v25 = vld [vmem:[#allocation3 + $0x90] ss:$36 sps:$4 sm:$0xff]   ;;  %v1976_v26 = vld [vmem:[#allocation3 + $0x98] ss:$36 sps:$4 sm:$0xff]  }
  0x18   :  { %1012 = vmatprep.subr.bf16.mxu1 %v1955_v12  ;;  %v1977_v27 = vld [vmem:[#allocation3 + $0x4c] ss:$36 sps:$4 sm:$0xff]   ;;  %v1979_v28 = vld [vmem:[#allocation3 + $0x54] ss:$36 sps:$4 sm:$0xff]   ;;  %v1983_v31 = vld [vmem:[#allocation3 + $0x4] ss:$36 sps:$4 sm:$0xff]  }
  0x19   :  { %v1981_v29 = vld [vmem:[#allocation3 + $0x48] ss:$36 sps:$4 sm:$0xff]   ;;  %v1982_v30 = vld [vmem:[#allocation3 + $0x50] ss:$36 sps:$4 sm:$0xff]   ;;  %v1987_v33 = vld [vmem:[#allocation3] ss:$36 sps:$4 sm:$0xff]  }
  0x1a   :  { %970 = vmatpush1.bf16.msra.mxu0 %v1957_v13  ;;  %v1985_v32 = vld [vmem:[#allocation3 + $0xc] ss:$36 sps:$4 sm:$0xff]   ;;  %v1989_v35 = vld [vmem:[#allocation3 + $0x43c] ss:$36 sps:$4 sm:$0xff]   ;;  %v1991_v36 = vld [vmem:[#allocation3 + $0x444] ss:$36 sps:$4 sm:$0xff]  }
  0x1b   :  { %1013 = vmatpush1.bf16.msra.mxu1 %v1958_v14  ;;  %971 = vmatprep.subr.bf16.mxu0 %v1959_v15  ;;  %v1988_v34 = vld [vmem:[#allocation3 + $0x8] ss:$36 sps:$4 sm:$0xff]   ;;  %v1993_v37 = vld [vmem:[#allocation3 + $0x438] ss:$36 sps:$4 sm:$0xff]   ;;  %v1994_v38 = vld [vmem:[#allocation3 + $0x440] ss:$36 sps:$4 sm:$0xff]  }
  0x1c   :  { %1014 = vmatprep.subr.bf16.mxu1 %v1961_v16  ;;  %v1995_v39 = vld [vmem:[#allocation3 + $0x3f4] ss:$36 sps:$4 sm:$0xff]   ;;  %v1997_v40 = vld [vmem:[#allocation3 + $0x3fc] ss:$36 sps:$4 sm:$0xff]   ;;  %v2001_v43 = vld [vmem:[#allocation3 + $0x3ac] ss:$36 sps:$4 sm:$0xff]  }
  0x1d   :  { %v1999_v41 = vld [vmem:[#allocation3 + $0x3f0] ss:$36 sps:$4 sm:$0xff]   ;;  %v2000_v42 = vld [vmem:[#allocation3 + $0x3f8] ss:$36 sps:$4 sm:$0xff]   ;;  %v2005_v45 = vld [vmem:[#allocation3 + $0x3a8] ss:$36 sps:$4 sm:$0xff]  }
  0x1e   :  { %972 = vmatpush1.bf16.msra.mxu0 %v1963_v17  ;;  %v2003_v44 = vld [vmem:[#allocation3 + $0x3b4] ss:$36 sps:$4 sm:$0xff]   ;;  %v2007_v47 = vld [vmem:[#allocation3 + $0x364] ss:$36 sps:$4 sm:$0xff]   ;;  %v2009_v48 = vld [vmem:[#allocation3 + $0x36c] ss:$36 sps:$4 sm:$0xff]  }
  0x1f   :  { %1015 = vmatpush1.bf16.msra.mxu1 %v1964_v18  ;;  %973 = vmatprep.subr.bf16.mxu0 %v1965_v19  ;;  %v2006_v46 = vld [vmem:[#allocation3 + $0x3b0] ss:$36 sps:$4 sm:$0xff]   ;;  %v2011_v49 = vld [vmem:[#allocation3 + $0x360] ss:$36 sps:$4 sm:$0xff]   ;;  %v2012_v50 = vld [vmem:[#allocation3 + $0x368] ss:$36 sps:$4 sm:$0xff]  }
  0x20   :  { %1016 = vmatprep.subr.bf16.mxu1 %v1967_v20  ;;  %v2013_v51 = vld [vmem:[#allocation3 + $0x31c] ss:$36 sps:$4 sm:$0xff]   ;;  %v2015_v52 = vld [vmem:[#allocation3 + $0x324] ss:$36 sps:$4 sm:$0xff]   ;;  %v2019_v55 = vld [vmem:[#allocation3 + $0x2d4] ss:$36 sps:$4 sm:$0xff]  }
  0x21   :  { %v2017_v53 = vld [vmem:[#allocation3 + $0x318] ss:$36 sps:$4 sm:$0xff]   ;;  %v2018_v54 = vld [vmem:[#allocation3 + $0x320] ss:$36 sps:$4 sm:$0xff]   ;;  %v2023_v57 = vld [vmem:[#allocation3 + $0x2d0] ss:$36 sps:$4 sm:$0xff]  }
  0x22   :  { %974 = vmatpush1.bf16.msra.mxu0 %v1969_v21  ;;  %v2021_v56 = vld [vmem:[#allocation3 + $0x2dc] ss:$36 sps:$4 sm:$0xff]   ;;  %v2025_v59 = vld [vmem:[#allocation3 + $0x28c] ss:$36 sps:$4 sm:$0xff]   ;;  %v2027_v60 = vld [vmem:[#allocation3 + $0x294] ss:$36 sps:$4 sm:$0xff]  }
  0x23   :  { %1017 = vmatpush1.bf16.msra.mxu1 %v1970_v22  ;;  %975 = vmatprep.subr.bf16.mxu0 %v1971_v23  ;;  %v2024_v58 = vld [vmem:[#allocation3 + $0x2d8] ss:$36 sps:$4 sm:$0xff]   ;;  %v2029_v61 = vld [vmem:[#allocation3 + $0x288] ss:$36 sps:$4 sm:$0xff]   ;;  %v2030_v62 = vld [vmem:[#allocation3 + $0x290] ss:$36 sps:$4 sm:$0xff]  }
  0x24   :  { %1018 = vmatprep.subr.bf16.mxu1 %v1973_v24  ;;  %v2031_v63 = vld [vmem:[#allocation3 + $0x244] ss:$36 sps:$4 sm:$0xff]   ;;  %v2033_v0 = vld [vmem:[#allocation3 + $0x24c] ss:$36 sps:$4 sm:$0xff]   ;;  %v2042_v4 = vld [vmem:[#allocation3 + $0x214] ss:$36 sps:$4 sm:$0xff]  }
  0x25   :  { %v2035_v1 = vld [vmem:[#allocation3 + $0x240] ss:$36 sps:$4 sm:$0xff]   ;;  %v2036_v2 = vld [vmem:[#allocation3 + $0x248] ss:$36 sps:$4 sm:$0xff]   ;;  %v47_v6 = vand.u32 127, %v46_v5  ;;  %v1219_v13 = vshrl.u32 %v46_v5, 7 }
  0x26   :  { %976 = vmatpush1.bf16.msra.mxu0 %v1975_v25  ;;  %v2039_v3 = vld [vmem:[#allocation3 + $0x20c] ss:$36 sps:$4 sm:$0xff]   ;;  %v2227_v14 = vmov 1.0|1.0   ;;  %v2045_v15 = vld [vmem:[#allocation3 + $0x1c4] ss:$36 sps:$4 sm:$0xff]  }
  0x27   :  { %1019 = vmatpush1.bf16.msra.mxu1 %v1976_v26  ;;  %977 = vmatprep.subr.bf16.mxu0 %v1977_v27  ;;  %v48_v8 = vadd.s32 128, %v47_v6  ;;  %v2037_v10 = vld [vmem:[#allocation3 + $0x208] ss:$36 sps:$4 sm:$0xff]   ;;  %v2040_v11 = vld [vmem:[#allocation3 + $0x210] ss:$36 sps:$4 sm:$0xff]   ;;  %s1683_s1 = sshll.u32 %s2234_s0, 4  ;;  %s1684_s1 = int_to_ptr.vmem [resolvable:$true] %s1683_s1 }
  0x28   :  { %1020 = vmatprep.subr.bf16.mxu1 %v1979_v28  ;;  %v2048_v16 = vld [vmem:[#allocation3 + $0x1cc] ss:$36 sps:$4 sm:$0xff]   ;;  %v2043_v17 = vld [vmem:[#allocation3 + $0x1c0] ss:$36 sps:$4 sm:$0xff]   ;;  %v2049_v21 = vld [vmem:[#allocation3 + $0x178] ss:$36 sps:$4 sm:$0xff]   ;;  %p2182_p6 = scmp.lt.s32.totalorder %s1684_s1, %s1684_s1 }
  0x29   :  { %v2046_v18 = vld [vmem:[#allocation3 + $0x1c8] ss:$36 sps:$4 sm:$0xff]   ;;  %v2051_v19 = vld [vmem:[#allocation3 + $0x17c] ss:$36 sps:$4 sm:$0xff]   ;;  %v2057_v23 = vld [vmem:[#allocation3 + $0x134] ss:$36 sps:$4 sm:$0xff]  }
  0x2a   :  { %978 = vmatpush1.bf16.msra.mxu0 %v1981_v29  ;;  %v2054_v20 = vld [vmem:[#allocation3 + $0x184] ss:$36 sps:$4 sm:$0xff]   ;;  %v2060_v24 = vld [vmem:[#allocation3 + $0x13c] ss:$36 sps:$4 sm:$0xff]   ;;  %v2055_v25 = vld [vmem:[#allocation3 + $0x130] ss:$36 sps:$4 sm:$0xff]  }
  0x2b   :  { %1021 = vmatpush1.bf16.msra.mxu1 %v1982_v30  ;;  %979 = vmatprep.subr.bf16.mxu0 %v1983_v31  ;;  %v2052_v22 = vld [vmem:[#allocation3 + $0x180] ss:$36 sps:$4 sm:$0xff]   ;;  %v2058_v26 = vld [vmem:[#allocation3 + $0x138] ss:$36 sps:$4 sm:$0xff]   ;;  %v2063_v27 = vld [vmem:[#allocation3 + $0xec] ss:$36 sps:$4 sm:$0xff]  }
  0x2c   :  { %1022 = vmatprep.subr.bf16.mxu1 %v1985_v32  ;;  %v2066_v28 = vld [vmem:[#allocation3 + $0xf4] ss:$36 sps:$4 sm:$0xff]   ;;  %v2061_v29 = vld [vmem:[#allocation3 + $0xe8] ss:$36 sps:$4 sm:$0xff]   ;;  %s2235_s23 = smov [#allocation7]   ;;  %s2177_s25 = scalar_lea.vmem %s1684_s1, 256 }
  0x2d   :  { %v2064_v30 = vld [vmem:[#allocation3 + $0xf0] ss:$36 sps:$4 sm:$0xff]   ;;  %v2069_v31 = vld [vmem:[#allocation3 + $0xa4] ss:$36 sps:$4 sm:$0xff]   ;;  %s1695_s24 = sshll.u32 %s2235_s23, 4  ;;  %p2178_p5 = scmp.ne.s32.totalorder %s1684_s1, %s2177_s25  ;;  %s1696_s24 = int_to_ptr.vmem [resolvable:$true] %s1695_s24 }
  0x2e   :  { %980 = vmatpush1.bf16.msra.mxu0 %v1987_v33  ;;  %v2072_v32 = vld [vmem:[#allocation3 + $0xac] ss:$36 sps:$4 sm:$0xff]   ;;  %v2067_v33 = vld [vmem:[#allocation3 + $0xa0] ss:$36 sps:$4 sm:$0xff]   ;;  %p2183_p7 = scmp.lt.s32.totalorder %s2177_s25, %s2177_s25 }
  0x2f   :  { %1023 = vmatpush1.bf16.msra.mxu1 %v1988_v34  ;;  %981 = vmatprep.subr.bf16.mxu0 %v1989_v35  ;;  %v2070_v34 = vld [vmem:[#allocation3 + $0xa8] ss:$36 sps:$4 sm:$0xff]   ;;  %v2075_v35 = vld [vmem:[#allocation3 + $0x5c] ss:$36 sps:$4 sm:$0xff]  }
  0x30   :  { %1024 = vmatprep.subr.bf16.mxu1 %v1991_v36  ;;  %v2078_v36 = vld [vmem:[#allocation3 + $0x64] ss:$36 sps:$4 sm:$0xff]   ;;  %p2184_p8 = por %p2183_p7, %p2182_p6 }
  0x31   :  { %v2145_v12 = vld [vmem:[#allocation3 + $0x2a8] ss:$36 sps:$4 sm:$0xff]  }
  0x32   :  { %982 = vmatpush2.bf16.msra.mxu0 %v1993_v37  ;;  %v2073_v37 = vld [vmem:[#allocation3 + $0x58] ss:$36 sps:$4 sm:$0xff]   ;;  %p2185_p9 = pnand %p2184_p8, %p2178_p5 }
  0x33   :  { %1025 = vmatpush2.bf16.msra.mxu1 %v1994_v38  ;;  %983 = vmatprep.subr.bf16.mxu0 %v1995_v39  ;;  %v2076_v38 = vld [vmem:[#allocation3 + $0x60] ss:$36 sps:$4 sm:$0xff]   ;;  %v2081_v39 = vld [vmem:[#allocation3 + $0x14] ss:$36 sps:$4 sm:$0xff]  }
  0x34   :  { %1026 = vmatprep.subr.bf16.mxu1 %v1997_v40  ;;  %v2084_v40 = vld [vmem:[#allocation3 + $0x1c] ss:$36 sps:$4 sm:$0xff]  }
  0x36   :  { %984 = vmatpush2.bf16.msra.mxu0 %v1999_v41  ;;  %v2079_v41 = vld [vmem:[#allocation3 + $0x10] ss:$36 sps:$4 sm:$0xff]  }
  0x37   :  { %1027 = vmatpush2.bf16.msra.mxu1 %v2000_v42  ;;  %985 = vmatprep.subr.bf16.mxu0 %v2001_v43  ;;  %v2082_v42 = vld [vmem:[#allocation3 + $0x18] ss:$36 sps:$4 sm:$0xff]   ;;  %v2087_v43 = vld [vmem:[#allocation3 + $0x44c] ss:$36 sps:$4 sm:$0xff]  }
  0x38   :  { %1028 = vmatprep.subr.bf16.mxu1 %v2003_v44  ;;  %v2090_v44 = vld [vmem:[#allocation3 + $0x454] ss:$36 sps:$4 sm:$0xff]  }
  0x3a   :  { %986 = vmatpush2.bf16.msra.mxu0 %v2005_v45  ;;  %v2085_v45 = vld [vmem:[#allocation3 + $0x448] ss:$36 sps:$4 sm:$0xff]  }
  0x3b   :  { %1029 = vmatpush2.bf16.msra.mxu1 %v2006_v46  ;;  %987 = vmatprep.subr.bf16.mxu0 %v2007_v47  ;;  %v2088_v46 = vld [vmem:[#allocation3 + $0x450] ss:$36 sps:$4 sm:$0xff]   ;;  %v2093_v47 = vld [vmem:[#allocation3 + $0x404] ss:$36 sps:$4 sm:$0xff]  }
  0x3c   :  { %1030 = vmatprep.subr.bf16.mxu1 %v2009_v48  ;;  %v2096_v48 = vld [vmem:[#allocation3 + $0x40c] ss:$36 sps:$4 sm:$0xff]  }
  0x3e   :  { %988 = vmatpush2.bf16.msra.mxu0 %v2011_v49  ;;  %v2091_v49 = vld [vmem:[#allocation3 + $0x400] ss:$36 sps:$4 sm:$0xff]  }
  0x3f   :  { %1031 = vmatpush2.bf16.msra.mxu1 %v2012_v50  ;;  %989 = vmatprep.subr.bf16.mxu0 %v2013_v51  ;;  %v2094_v50 = vld [vmem:[#allocation3 + $0x408] ss:$36 sps:$4 sm:$0xff]   ;;  %v2099_v51 = vld [vmem:[#allocation3 + $0x3bc] ss:$36 sps:$4 sm:$0xff]  }
  0x40   :  { %1032 = vmatprep.subr.bf16.mxu1 %v2015_v52  ;;  %v2102_v52 = vld [vmem:[#allocation3 + $0x3c4] ss:$36 sps:$4 sm:$0xff]  }
  0x42   :  { %990 = vmatpush2.bf16.msra.mxu0 %v2017_v53  ;;  %v2097_v53 = vld [vmem:[#allocation3 + $0x3b8] ss:$36 sps:$4 sm:$0xff]  }
  0x43   :  { %1033 = vmatpush2.bf16.msra.mxu1 %v2018_v54  ;;  %991 = vmatprep.subr.bf16.mxu0 %v2019_v55  ;;  %v2100_v54 = vld [vmem:[#allocation3 + $0x3c0] ss:$36 sps:$4 sm:$0xff]   ;;  %v2105_v55 = vld [vmem:[#allocation3 + $0x374] ss:$36 sps:$4 sm:$0xff]  }
  0x44   :  { %1034 = vmatprep.subr.bf16.mxu1 %v2021_v56  ;;  %v2108_v56 = vld [vmem:[#allocation3 + $0x37c] ss:$36 sps:$4 sm:$0xff]  }
  0x46   :  { %992 = vmatpush2.bf16.msra.mxu0 %v2023_v57  ;;  %v2103_v57 = vld [vmem:[#allocation3 + $0x370] ss:$36 sps:$4 sm:$0xff]  }
  0x47   :  { %1035 = vmatpush2.bf16.msra.mxu1 %v2024_v58  ;;  %993 = vmatprep.subr.bf16.mxu0 %v2025_v59  ;;  %v2106_v58 = vld [vmem:[#allocation3 + $0x378] ss:$36 sps:$4 sm:$0xff]   ;;  %v2111_v59 = vld [vmem:[#allocation3 + $0x32c] ss:$36 sps:$4 sm:$0xff]  }
  0x48   :  { %1036 = vmatprep.subr.bf16.mxu1 %v2027_v60  ;;  %v2114_v60 = vld [vmem:[#allocation3 + $0x334] ss:$36 sps:$4 sm:$0xff]  }
  0x4a   :  { %994 = vmatpush2.bf16.msra.mxu0 %v2029_v61  ;;  %v2109_v61 = vld [vmem:[#allocation3 + $0x328] ss:$36 sps:$4 sm:$0xff]  }
  0x4b   :  { %1037 = vmatpush2.bf16.msra.mxu1 %v2030_v62  ;;  %995 = vmatprep.subr.bf16.mxu0 %v2031_v63  ;;  %v2112_v62 = vld [vmem:[#allocation3 + $0x330] ss:$36 sps:$4 sm:$0xff]   ;;  %v2117_v63 = vld [vmem:[#allocation3 + $0x2e4] ss:$36 sps:$4 sm:$0xff]  }
  0x4c   :  { %1038 = vmatprep.subr.bf16.mxu1 %v2033_v0  ;;  %v2120_v0 = vld [vmem:[#allocation3 + $0x2ec] ss:$36 sps:$4 sm:$0xff]  }
  0x4e   :  { %996 = vmatpush2.bf16.msra.mxu0 %v2035_v1  ;;  %v2115_v1 = vld [vmem:[#allocation3 + $0x2e0] ss:$36 sps:$4 sm:$0xff]  }
  0x4f   :  { %1039 = vmatpush2.bf16.msra.mxu1 %v2036_v2  ;;  %1051 = vmatprep.subr.bf16.mxu0 %v2039_v3  ;;  %v2118_v2 = vld [vmem:[#allocation3 + $0x2e8] ss:$36 sps:$4 sm:$0xff]   ;;  %v2123_v3 = vld [vmem:[#allocation3 + $0x29c] ss:$36 sps:$4 sm:$0xff]  }
  0x50   :  { %1094 = vmatprep.subr.bf16.mxu1 %v2042_v4  ;;  %v2126_v4 = vld [vmem:[#allocation3 + $0x2a4] ss:$36 sps:$4 sm:$0xff]  }
  0x8c   :  { %v51_v7 = vpop.permute.xlu0 %50 }
  0x8d   :  { %vm56_vm0 = vcmp.eq.s32.totalorder %v51_v7, %v48_v8  ;;  %vm55_vm3 = vcmp.eq.s32.totalorder %v51_v7, %v47_v6  ;;  %v2124_v7 = vld [vmem:[#allocation3 + $0x2a0] ss:$36 sps:$4 sm:$0xff]  }
  0x90   :  { %v54_v9 = vpop.permute.xlu0 %53 }
  0x91   :  { %vm57_vm1 = vcmp.eq.s32.totalorder %v54_v9, %v47_v6  ;;  %vm58_vm2 = vcmp.eq.s32.totalorder %v54_v9, %v48_v8  ;;  %v2121_v6 = vld [vmem:[#allocation3 + $0x298] ss:$36 sps:$4 sm:$0xff]  }
  0x92   :  { %vm2268_vm4 = vmpackc.low %vm58_vm2, %vm56_vm0  ;;  %v2129_v8 = vld [vmem:[#allocation3 + $0x254] ss:$36 sps:$4 sm:$0xff]   ;;  %v2132_v9 = vld [vmem:[#allocation3 + $0x25c] ss:$36 sps:$4 sm:$0xff]  }
  0x93   :  { %vm2272_vm5 = vmpackc.low %vm57_vm1, %vm55_vm3  ;;  %1860 = vmatprep.mubr.msk.bf16.mxu0 %vm2268_vm4, %v2227_v14  ;;  %1864 = vmatprep.mubr.msk.bf16.mxu1 %vm2268_vm4, %v2227_v14 }
  0x94   :  { %1862 = vmatmul.mubr.msk.bf16.vlgmr.msra.gmra.mxu0 %vm2272_vm5, %v2227_v14  ;;  %1866 = vmatmul.mubr.msk.bf16.vlgmr.msra.gmra.mxu1 %vm2272_vm5, %v2227_v14 }
  0x95   :  { %1052 = vmatpush1.bf16.msra.mxu0 %v2037_v10  ;;  %1095 = vmatpush1.bf16.msra.mxu1 %v2040_v11  ;;  %v2127_v10 = vld [vmem:[#allocation3 + $0x250] ss:$36 sps:$4 sm:$0xff]   ;;  %v2130_v11 = vld [vmem:[#allocation3 + $0x258] ss:$36 sps:$4 sm:$0xff]  }
  0x96   :  { %1868 = vmatprep.mubr.msk.bf16.mxu0 %vm2268_vm4, %v2227_v14  ;;  %1872 = vmatprep.mubr.msk.bf16.mxu1 %vm2268_vm4, %v2227_v14 }
  0x97   :  { %1053 = vmatprep.subr.bf16.mxu0 %v2045_v15  ;;  %1096 = vmatprep.subr.bf16.mxu1 %v2048_v16  ;;  %v2133_v15 = vld [vmem:[#allocation3 + $0x458] ss:$36 sps:$4 sm:$0xff]  }
  0x98   :  { %v2134_v16 = vld [vmem:[#allocation3 + $0x218] ss:$36 sps:$4 sm:$0xff]  }
  0x99   :  { %1054 = vmatpush1.bf16.msra.mxu0 %v2043_v17  ;;  %1097 = vmatpush1.bf16.msra.mxu1 %v2046_v18  ;;  %v2135_v17 = vld [vmem:[#allocation3 + $0x410] ss:$36 sps:$4 sm:$0xff]  }
  0x9a   :  { %1055 = vmatprep.subr.bf16.mxu0 %v2051_v19  ;;  %1098 = vmatprep.subr.bf16.mxu1 %v2054_v20  ;;  %v2136_v18 = vld [vmem:[#allocation3 + $0x1d0] ss:$36 sps:$4 sm:$0xff]   ;;  %v2137_v19 = vld [vmem:[#allocation3 + $0x3c8] ss:$36 sps:$4 sm:$0xff]  }
  0x9b   :  { %v2138_v20 = vld [vmem:[#allocation3 + $0x188] ss:$36 sps:$4 sm:$0xff]  }
  0x9d   :  { %1056 = vmatpush1.bf16.msra.mxu0 %v2049_v21  ;;  %1099 = vmatpush1.bf16.msra.mxu1 %v2052_v22  ;;  %v2139_v21 = vld [vmem:[#allocation3 + $0x380] ss:$36 sps:$4 sm:$0xff]  }
  0x9e   :  { %1057 = vmatprep.subr.bf16.mxu0 %v2057_v23  ;;  %1100 = vmatprep.subr.bf16.mxu1 %v2060_v24  ;;  %v2140_v22 = vld [vmem:[#allocation3 + $0x140] ss:$36 sps:$4 sm:$0xff]   ;;  %v2141_v23 = vld [vmem:[#allocation3 + $0x338] ss:$36 sps:$4 sm:$0xff]  }
  0x9f   :  { %v2142_v24 = vld [vmem:[#allocation3 + $0xf8] ss:$36 sps:$4 sm:$0xff]  }
  0xa1   :  { %1058 = vmatpush1.bf16.msra.mxu0 %v2055_v25  ;;  %1101 = vmatpush1.bf16.msra.mxu1 %v2058_v26  ;;  %v2143_v25 = vld [vmem:[#allocation3 + $0x2f0] ss:$36 sps:$4 sm:$0xff]  }
  0xa2   :  { %1059 = vmatprep.subr.bf16.mxu0 %v2063_v27  ;;  %1102 = vmatprep.subr.bf16.mxu1 %v2066_v28  ;;  %v2144_v26 = vld [vmem:[#allocation3 + $0xb0] ss:$36 sps:$4 sm:$0xff]   ;;  %v2146_v27 = vld [vmem:[#allocation3 + $0x68] ss:$36 sps:$4 sm:$0xff]   ;;  %v2147_v28 = vld [vmem:[#allocation3 + $0x260] ss:$36 sps:$4 sm:$0xff]  }
  0xa5   :  { %1060 = vmatpush1.bf16.msra.mxu0 %v2061_v29  ;;  %1103 = vmatpush1.bf16.msra.mxu1 %v2064_v30  ;;  %v2148_v29 = vld [vmem:[#allocation3 + $0x20] ss:$36 sps:$4 sm:$0xff]  }
  0xa6   :  { %1061 = vmatprep.subr.bf16.mxu0 %v2069_v31  ;;  %1104 = vmatprep.subr.bf16.mxu1 %v2072_v32 }
  0xa9   :  { %1062 = vmatpush1.bf16.msra.mxu0 %v2067_v33  ;;  %1105 = vmatpush1.bf16.msra.mxu1 %v2070_v34 }
  0xaa   :  { %1063 = vmatprep.subr.bf16.mxu0 %v2075_v35  ;;  %1106 = vmatprep.subr.bf16.mxu1 %v2078_v36 }
  0xad   :  { %1064 = vmatpush1.bf16.msra.mxu0 %v2073_v37  ;;  %1107 = vmatpush1.bf16.msra.mxu1 %v2076_v38 }
  0xae   :  { %1065 = vmatprep.subr.bf16.mxu0 %v2081_v39  ;;  %1108 = vmatprep.subr.bf16.mxu1 %v2084_v40 }
  0xb1   :  { %1066 = vmatpush1.bf16.msra.mxu0 %v2079_v41  ;;  %1109 = vmatpush1.bf16.msra.mxu1 %v2082_v42 }
  0xb2   :  { %1067 = vmatprep.subr.bf16.mxu0 %v2087_v43  ;;  %1110 = vmatprep.subr.bf16.mxu1 %v2090_v44 }
  0xb5   :  { %1068 = vmatpush2.bf16.msra.mxu0 %v2085_v45  ;;  %1111 = vmatpush2.bf16.msra.mxu1 %v2088_v46  ;;  %v1228_v46 = vand.u32 7, %v1219_v13 }
  0xb6   :  { %1069 = vmatprep.subr.bf16.mxu0 %v2093_v47  ;;  %1112 = vmatprep.subr.bf16.mxu1 %v2096_v48  ;;  %v1220_v47 = vadd.s32 8, %v1219_v13 }
  0xb9   :  { %1070 = vmatpush2.bf16.msra.mxu0 %v2091_v49  ;;  %1113 = vmatpush2.bf16.msra.mxu1 %v2094_v50  ;;  %v1248_v50 = vadd.s32 1, %v1228_v46 }
  0xba   :  { %1071 = vmatprep.subr.bf16.mxu0 %v2099_v51  ;;  %1114 = vmatprep.subr.bf16.mxu1 %v2102_v52  ;;  %v1235_v51 = vand.u32 7, %v1220_v47 }
  0xbd   :  { %1072 = vmatpush2.bf16.msra.mxu0 %v2097_v53  ;;  %1115 = vmatpush2.bf16.msra.mxu1 %v2100_v54 }
  0xbe   :  { %1073 = vmatprep.subr.bf16.mxu0 %v2105_v55  ;;  %1116 = vmatprep.subr.bf16.mxu1 %v2108_v56  ;;  %v1250_v55 = vcvt.s32.f32 %v1248_v50 }
  0xc1   :  { %1074 = vmatpush2.bf16.msra.mxu0 %v2103_v57  ;;  %1117 = vmatpush2.bf16.msra.mxu1 %v2106_v58  ;;  %v1249_v57 = vadd.s32 1, %v1235_v51 }
  0xc2   :  { %1075 = vmatprep.subr.bf16.mxu0 %v2111_v59  ;;  %1118 = vmatprep.subr.bf16.mxu1 %v2114_v60 }
  0xc5   :  { %1076 = vmatpush2.bf16.msra.mxu0 %v2109_v61  ;;  %1119 = vmatpush2.bf16.msra.mxu1 %v2112_v62 }
  0xc6   :  { %1077 = vmatprep.subr.bf16.mxu0 %v2117_v63  ;;  %1120 = vmatprep.subr.bf16.mxu1 %v2120_v0  ;;  %v1251_v0 = vcvt.s32.f32 %v1249_v57 }
  0xc9   :  { %1078 = vmatpush2.bf16.msra.mxu0 %v2115_v1  ;;  %1121 = vmatpush2.bf16.msra.mxu1 %v2118_v2 }
  0xca   :  { %1079 = vmatprep.subr.bf16.mxu0 %v2123_v3  ;;  %1122 = vmatprep.subr.bf16.mxu1 %v2126_v4 }
  0xcd   :  { %1080 = vmatpush2.bf16.msra.mxu0 %v2121_v6  ;;  %1123 = vmatpush2.bf16.msra.mxu1 %v2124_v7 }
  0xce   :  { %1081 = vmatprep.subr.bf16.mxu0 %v2129_v8  ;;  %1124 = vmatprep.subr.bf16.mxu1 %v2132_v9 }
  0xd1   :  { %1082 = vmatpush2.bf16.msra.mxu0 %v2127_v10  ;;  %1125 = vmatpush2.bf16.msra.mxu1 %v2130_v11 }
  0xd2   :  { %1895 = vmatprep.subr.bf16.mxu0 %v2133_v15 }
  0xd4   :  { %1870 = vmatmul.mubr.msk.bf16.vlgmr.msra.gmra.mxu0 %vm2272_vm5, %v2227_v14  ;;  %1874 = vmatmul.mubr.msk.bf16.vlgmr.msra.gmra.mxu1 %vm2272_vm5, %v2227_v14 }
  0xd5   :  { %1896 = vmatpush3.bf16.msra.mxu0 %v2134_v16  ;;  %1876 = vmatprep.mubr.msk.bf16.mxu0 %vm2268_vm4, %v2227_v14 }
  0xd6   :  { %1897 = vmatprep.subr.bf16.mxu0 %v2135_v17 }
  0xd9   :  { %1898 = vmatpush3.bf16.msra.mxu0 %v2136_v18 }
  0xda   :  { %1899 = vmatprep.subr.bf16.mxu0 %v2137_v19 }
  0xdd   :  { %1900 = vmatpush3.bf16.msra.mxu0 %v2138_v20 }
  0xde   :  { %1901 = vmatprep.subr.bf16.mxu0 %v2139_v21 }
  0xe1   :  { %1902 = vmatpush3.bf16.msra.mxu0 %v2140_v22 }
  0xe2   :  { %1903 = vmatprep.subr.bf16.mxu0 %v2141_v23 }
  0xe5   :  { %1904 = vmatpush3.bf16.msra.mxu0 %v2142_v24 }
  0xe6   :  { %1905 = vmatprep.subr.bf16.mxu0 %v2143_v25 }
  0xe9   :  { %1906 = vmatpush3.bf16.msra.mxu0 %v2144_v26 }
  0xea   :  { %1907 = vmatprep.subr.bf16.mxu0 %v2145_v12 }
  0xed   :  { %1908 = vmatpush3.bf16.msra.mxu0 %v2146_v27 }
  0xee   :  { %1909 = vmatprep.subr.bf16.mxu0 %v2147_v28  ;;  %v2228_v28 = vmov 683565275  }
  0xf1   :  { %1910 = vmatpush3.bf16.msra.mxu0 %v2148_v29 }
  0xf4   :  { %1878 = vmatmul.mubr.msk.bf16.vlgmr.msra.gmra.mxu0 %vm2272_vm5, %v2227_v14 }
 0x154   :  { %v999_v30 = vpop.f32.mrf.mxu0  ;;  %v1042_v31 = vpop.f32.mrf.mxu1 }
 0x156   :  { %v1001_v32 = vpop.f32.mrf.mxu0  ;;  %v1044_v33 = vpop.f32.mrf.mxu1 }
 0x157   :  { %v1184_v34 = vadd.f32 %v1044_v33, %v999_v30 }
 0x158   :  { %v1046_v35 = vpop.f32.mrf.mxu1  ;;  %v1003_v36 = vpop.f32.mrf.mxu0 }
 0x15a   :  { %v1048_v37 = vpop.f32.mrf.mxu1  ;;  %v1005_v44 = vpop.f32.mrf.mxu0 }
 0x15b   :  { %v1187_v38 = vadd.f32 %v1048_v37, %v1003_v36  ;;  %v2231_v36 = vmov 2102212464  }
 0x194   :  { %v1128_v39 = vpop.f32.mrf.mxu1  ;;  %v1085_v45 = vpop.f32.mrf.mxu0 }
 0x195   :  { %v2306_v40 = vadd.f32 %v1184_v34, %v1128_v39  ;;  %v1185_v49 = vadd.f32 %v1085_v45, %v1001_v32  ;;  %v2229_v32 = vmov 2475754826   ;;  %v2230_v34 = vmov 2131351028  }
 0x196   :  { %v1130_v41 = vpop.f32.mrf.mxu1  ;;  %v1087_v14 = vpop.f32.mrf.mxu0 }
 0x197   :  { %v1191_v54 = vadd.f32 %v1185_v49, %v1130_v41  ;;  %v1186_v60 = vadd.f32 %v1087_v14, %v1042_v31  ;;  %v2233_v14 = vmov 1326507024  }
 0x198   :  { %v1132_v42 = vpop.f32.mrf.mxu1  ;;  %v1089_v48 = vpop.f32.mrf.mxu0 }
 0x199   :  { %v2308_v43 = vadd.f32 %v1187_v38, %v1132_v42  ;;  %v1188_v56 = vadd.f32 %v1089_v48, %v1005_v44  ;;  %v1252_v63 = vmul.f32 %v1250_v55, %v1191_v54  ;;  %v2232_v38 = vmov 920167782  }
 0x19a   :  { %v1091_v52 = vpop.f32.mrf.mxu0  ;;  %v1134_v58 = vpop.f32.mrf.mxu1 }
 0x19b   :  { %v1194_v5 = vadd.f32 %v1188_v56, %v1134_v58  ;;  %v1189_v3 = vadd.f32 %v1091_v52, %v1046_v35 }
 0x19d   :  { %v1253_v7 = vmul.f32 %v1251_v0, %v1194_v5 }
 0x1b4   :  { %v1911_v53 = vpop.f32.mrf.mxu0 }
 0x1b6   :  { %v1912_v59 = vpop.f32.mrf.mxu0 }
 0x1b7   :  { %v1913_v61 = vadd.f32 %v1912_v59, %v1911_v53 }
 0x1b8   :  { %v1914_v62 = vpop.f32.mrf.mxu0 }
 0x1b9   :  { %v1192_v1 = vadd.f32 %v1913_v61, %v1186_v60 }
 0x1ba   :  { %v1915_v2 = vpop.f32.mrf.mxu0 }
 0x1bb   :  { %v2311_v4 = vadd.f32 %v1252_v63, %v1192_v1  ;;  %v1916_v6 = vadd.f32 %v1915_v2, %v1914_v62 }
 0x1bd   :  { %v1256_v8 = vand.u32 2147483647, %v2311_v4  ;;  %v1259_v9 = vand.u32 2139095040, %v2311_v4  ;;  %v1195_v10 = vadd.f32 %v1916_v6, %v1189_v3  ;;  %vm1258_vm4 = vcmp.lt.s32.totalorder %v2311_v4, 0 }
 0x1bf   :  { %v1260_v11 = vshrl.u32 %v1259_v9, 23  ;;  %v2315_v15 = vadd.f32 %v1253_v7, %v1195_v10  ;;  %v1263_v16 = vand.u32 8388607, %v1256_v8  ;;  %vm1257_vm5 = vcmp.le.f32.partialorder %v1256_v8, 0.7853982 }
 0x1c1   :  { %v1879_v17 = vadd.s32 4294967169, %v1260_v11  ;;  %v1362_v18 = vand.u32 2139095040, %v2315_v15  ;;  %v1264_v20 = vor.u32 8388608, %v1263_v16  ;;  %v1359_v22 = vand.u32 2147483647, %v2315_v15 }
 0x1c3   :  { %v1266_v19 = vadd.s32 1, %v1879_v17  ;;  %v1363_v21 = vshrl.u32 %v1362_v18, 23  ;;  %v2321_v12 = vshll.u32 %v1264_v20, 8  ;;  %v1366_v30 = vand.u32 8388607, %v1359_v22 }
 0x1c5   :  { %vm1267_vm6 = vcmp.gt.s32.totalorder %v1266_v19, 0  ;;  %v1883_v24 = vadd.s32 4294967169, %v1363_v21  ;;  %v1367_v60 = vor.u32 8388608, %v1366_v30 }
 0x1c6   :  { %v1268_v23 = vsel %vm1267_vm6, %v1266_v19, 0  ;;  %vm1361_vm6 = vcmp.lt.s32.totalorder %v2315_v15, 0 }
 0x1c7   :  { %v1269_v25 = vshrl.u32 %v1268_v23, 5  ;;  %v1270_v26 = vand.u32 31, %v1268_v23  ;;  %v1369_v31 = vadd.s32 1, %v1883_v24  ;;  %v1407_v11 = vshll.u32 %v1367_v60, 8 }
 0x1c9   :  { %v1271_v27 = vsub.s32 32, %v1270_v26  ;;  %v1273_v29 = vshll.u32 %v2228_v28, %v1270_v26  ;;  %v1276_v33 = vshll.u32 %v2229_v32, %v1270_v26  ;;  %v1279_v35 = vshll.u32 %v2230_v34, %v1270_v26 }
 0x1ca   :  { %v1282_v37 = vshll.u32 %v2231_v36, %v1270_v26  ;;  %v1285_v39 = vshll.u32 %v2232_v38, %v1270_v26  ;;  %vm1288_vm7 = vcmp.lt.s32.totalorder %v1269_v25, 1  ;;  %vm1290_vm8 = vcmp.lt.s32.totalorder %v1269_v25, 3 }
 0x1cb   :  { %v1274_v41 = vshrl.u32 %v2229_v32, %v1271_v27  ;;  %v1277_v42 = vshrl.u32 %v2230_v34, %v1271_v27  ;;  %v1280_v44 = vshrl.u32 %v2231_v36, %v1271_v27  ;;  %v1272_v45 = vshrl.u32 %v2228_v28, %v1271_v27 }
 0x1cc   :  { %v1283_v13 = vshrl.u32 %v2232_v38, %v1271_v27  ;;  %v1286_v46 = vshrl.u32 %v2233_v14, %v1271_v27  ;;  %vm1370_vm9 = vcmp.gt.s32.totalorder %v1369_v31, 0  ;;  %vm1291_vm10 = vcmp.lt.s32.totalorder %v1269_v25, 4 }
 0x1cd   :  { %v1275_v47 = vor.u32 %v1274_v41, %v1273_v29  ;;  %v1278_v48 = vor.u32 %v1277_v42, %v1276_v33  ;;  %v1281_v49 = vor.u32 %v1280_v44, %v1279_v35  ;;  %v1371_v52 = vsel %vm1370_vm9, %v1369_v31, 0 }
 0x1ce   :  { %v1284_v50 = vor.u32 %v1283_v13, %v1282_v37  ;;  %v1287_v51 = vor.u32 %v1286_v46, %v1285_v39  ;;  %vm1289_vm11 = vcmp.lt.s32.totalorder %v1269_v25, 2  ;;  %v1373_v63 = vand.u32 31, %v1371_v52 }
 0x1cf   :  { %v1292_v53 = vsel %vm1288_vm7, %v1272_v45, %v1275_v47  ;;  %v1293_v54 = vsel %vm1291_vm10, %v1281_v49, 2102212464  ;;  %v1296_v55 = vsel %vm1288_vm7, %v1275_v47, %v1278_v48  ;;  %v1300_v56 = vsel %vm1288_vm7, %v1278_v48, %v1281_v49 }
 0x1d0   :  { %v1294_v57 = vsel %vm1290_vm8, %v1278_v48, %v1293_v54  ;;  %v1297_v58 = vsel %vm1291_vm10, %v1284_v50, 920167782  ;;  %v1301_v59 = vsel %vm1291_vm10, %v1287_v51, 1326507024  ;;  %v1372_v9 = vshrl.u32 %v1371_v52, 5 }
 0x1d1   :  { %v1298_v61 = vsel %vm1290_vm8, %v1281_v49, %v1297_v58  ;;  %v1302_v62 = vsel %vm1290_vm8, %v1284_v50, %v1301_v59  ;;  %v1295_v5 = vsel %vm1289_vm11, %v1292_v53, %v1294_v57  ;;  %v1374_v10 = vsub.s32 32, %v1373_v63 }
 0x1d2   :  { %v1299_v0 = vsel %vm1289_vm11, %v1296_v55, %v1298_v61  ;;  %v1303_v1 = vsel %vm1289_vm11, %v1300_v56, %v1302_v62  ;;  %v1311_v16 = vmul.u32 %v2321_v12, %v1295_v5  ;;  %v1376_v17 = vshll.u32 %v2228_v28, %v1373_v63 }
 0x1d3   :  { %v2334_v2 = vmul.u32.u64.low %v2321_v12, %v1303_v1  ;;  %v2335_v3 = vmul.u32.u64.high %v2321_v12, %v1303_v1, %v2334_v2  ;;  %v2338_v6 = vmul.u32.u64.low %v2321_v12, %v1299_v0  ;;  %v2339_v7 = vmul.u32.u64.high %v2321_v12, %v1299_v0, %v2338_v6 }
 0x1d4   :  { %v1379_v18 = vshll.u32 %v2229_v32, %v1373_v63  ;;  %v1382_v19 = vshll.u32 %v2230_v34, %v1373_v63  ;;  %v1377_v20 = vshrl.u32 %v2229_v32, %v1374_v10  ;;  %v1380_v21 = vshrl.u32 %v2230_v34, %v1374_v10 }
 0x1d5   :  { %v1383_v23 = vshrl.u32 %v2231_v36, %v1374_v10  ;;  %v1385_v24 = vshll.u32 %v2231_v36, %v1373_v63  ;;  %vm1313_vm12 = vc.u32 %v2335_v3, %v2338_v6  ;;  %v1314_v25 = vadd.s32 1, %v2339_v7 }
 0x1d6   :  { %v1386_v26 = vshrl.u32 %v2232_v38, %v1374_v10  ;;  %v1388_v27 = vshll.u32 %v2232_v38, %v1373_v63  ;;  %v1378_v29 = vor.u32 %v1377_v20, %v1376_v17  ;;  %v1381_v30 = vor.u32 %v1380_v21, %v1379_v18 }
 0x1d7   :  { %v1384_v31 = vor.u32 %v1383_v23, %v1382_v19  ;;  %v1389_v33 = vshrl.u32 %v2233_v14, %v1374_v10  ;;  %v1315_v12 = vsel %vm1313_vm12, %v1314_v25, %v2339_v7  ;;  %vm1391_vm13 = vcmp.lt.s32.totalorder %v1372_v9, 1 }
 0x1d8   :  { %v1387_v35 = vor.u32 %v1386_v26, %v1385_v24  ;;  %vm1394_vm14 = vcmp.lt.s32.totalorder %v1372_v9, 4  ;;  %v1316_v32 = vadd.s32 %v1315_v12, %v1311_v16  ;;  %vm1393_vm15 = vcmp.lt.s32.totalorder %v1372_v9, 3 }
 0x1d9   :  { %v1390_v34 = vor.u32 %v1389_v33, %v1388_v27  ;;  %v1396_v36 = vsel %vm1394_vm14, %v1384_v31, 2102212464  ;;  %v1375_v37 = vshrl.u32 %v2228_v28, %v1374_v10  ;;  %v1399_v39 = vsel %vm1391_vm13, %v1378_v29, %v1381_v30 }
 0x1da   :  { %v1400_v41 = vsel %vm1394_vm14, %v1387_v35, 920167782  ;;  %v1403_v42 = vsel %vm1391_vm13, %v1381_v30, %v1384_v31  ;;  %v1317_v44 = vadd.s32 536870912, %v1316_v32  ;;  %vm1392_vm0 = vcmp.lt.s32.totalorder %v1372_v9, 2 }
 0x1db   :  { %v1401_v38 = vsel %vm1393_vm15, %v1384_v31, %v1400_v41  ;;  %v1404_v45 = vsel %vm1394_vm14, %v1390_v34, 1326507024  ;;  %v1395_v13 = vsel %vm1391_vm13, %v1375_v37, %v1378_v29  ;;  %v1397_v14 = vsel %vm1393_vm15, %v1381_v30, %v1396_v36 }
 0x1dc   :  { %v1402_v46 = vsel %vm1392_vm0, %v1399_v39, %v1401_v38  ;;  %v1405_v47 = vsel %vm1393_vm15, %v1387_v35, %v1404_v45  ;;  %v1318_v48 = vshrl.u32 %v1317_v44, 30  ;;  %v1398_v54 = vsel %vm1392_vm0, %v1395_v13, %v1397_v14 }
 0x1dd   :  { %v1406_v49 = vsel %vm1392_vm0, %v1403_v42, %v1405_v47  ;;  %v2349_v50 = vmul.u32.u64.low %v1407_v11, %v1402_v46  ;;  %v2350_v51 = vmul.u32.u64.high %v1407_v11, %v1402_v46, %v2349_v50  ;;  %v1414_v57 = vmul.u32 %v1407_v11, %v1398_v54 }
 0x1de   :  { %v2352_v52 = vmul.u32.u64.low %v1407_v11, %v1406_v49  ;;  %v2353_v53 = vmul.u32.u64.high %v1407_v11, %v1406_v49, %v2352_v52  ;;  %v1319_v28 = vshll.u32 %v1318_v48, 30  ;;  %v1312_v9 = vadd.s32 %v2338_v6, %v2335_v3 }
 0x1df   :  { %v1417_v56 = vadd.s32 1, %v2350_v51  ;;  %v1342_v35 = vsub.s32 4, %v1318_v48  ;;  %vm1360_vm7 = vcmp.le.f32.partialorder %v1359_v22, 0.7853982  ;;  %vm1348_vm14 = vweird.f32 %v2311_v4 }
 0x1e0   :  { %v1320_v55 = vsub.s32 %v1316_v32, %v1319_v28  ;;  %vm1416_vm1 = vc.u32 %v2353_v53, %v2349_v50  ;;  %v1415_v33 = vadd.s32 %v2349_v50, %v2353_v53 }
 0x1e1   :  { %v1418_v59 = vsel %vm1416_vm1, %v1417_v56, %v2350_v51  ;;  %v1343_v44 = vsel %vm1258_vm4, %v1342_v35, %v1318_v48 }
 0x1e2   :  { %v1322_v58 = vsub.s32 0, %v1320_v55  ;;  %v1419_v60 = vadd.s32 %v1418_v59, %v1414_v57  ;;  %v1345_v14 = vsel %vm1257_vm5, 0, %v1343_v44 }
 0x1e3   :  { %v1559_v49 = vadd.s32 3, %v1345_v14  ;;  %v1349_v52 = vand.u32 3, %v1345_v14 }
 0x1e4   :  { %v1880_v61 = vmin.u32 %v1322_v58, %v1320_v55  ;;  %v1420_v62 = vadd.s32 536870912, %v1419_v60 }
 0x1e5   :  { %v1560_v48 = vand.u32 3, %v1559_v49  ;;  %vm1354_vm8 = vcmp.eq.s32.totalorder %v1349_v52, 2  ;;  %vm1351_vm10 = vcmp.eq.s32.totalorder %v1349_v52, 0  ;;  %vm1350_vm12 = vcmp.lt.s32.totalorder %v1349_v52, 2 }
 0x1e6   :  { %v1324_v63 = vclz %v1880_v61  ;;  %v1421_v5 = vshrl.u32 %v1420_v62, 30 }
 0x1e7   :  { %vm1565_vm9 = vcmp.eq.s32.totalorder %v1560_v48, 2  ;;  %vm1562_vm11 = vcmp.eq.s32.totalorder %v1560_v48, 0  ;;  %vm1561_vm13 = vcmp.lt.s32.totalorder %v1560_v48, 2 }
 0x1e8   :  { %v1881_v0 = vadd.s32 4294967294, %v1324_v63  ;;  %v1422_v1 = vshll.u32 %v1421_v5, 30  ;;  %v1445_v50 = vsub.s32 4, %v1421_v5 }
 0x1ea   :  { %vm1882_vm2 = vcmp.lt.s32.totalorder %v1881_v0, 0  ;;  %v1423_v7 = vsub.s32 %v1419_v60, %v1422_v1  ;;  %v1446_v53 = vsel %vm1361_vm6, %v1445_v50, %v1421_v5 }
 0x1eb   :  { %v1327_v2 = vsel %vm1882_vm2, 0, %v1881_v0  ;;  %v1448_v56 = vsel %vm1360_vm7, 0, %v1446_v53 }
 0x1ec   :  { %v1328_v10 = vsub.s32 32, %v1327_v2  ;;  %v1332_v11 = vsub.s32 4294967266, %v1327_v2  ;;  %v1425_v16 = vsub.s32 0, %v1423_v7  ;;  %v1329_v17 = vshll.u32 %v1320_v55, %v1327_v2 }
 0x1ed   :  { %v1663_v63 = vadd.s32 3, %v1448_v56 }
 0x1ee   :  { %v1330_v18 = vshrl.u32 %v1312_v9, %v1328_v10  ;;  %v1333_v19 = vadd.s32 127, %v1332_v11  ;;  %v1884_v20 = vmin.u32 %v1425_v16, %v1423_v7 }
 0x1ef   :  { %v1664_v9 = vand.u32 3, %v1663_v63 }
 0x1f0   :  { %v1331_v21 = vor.u32 %v1330_v18, %v1329_v17  ;;  %v1334_v23 = vshll.u32 %v1333_v19, 23  ;;  %v1427_v24 = vclz %v1884_v20 }
 0x1f1   :  { %vm1669_vm0 = vcmp.eq.s32.totalorder %v1664_v9, 2  ;;  %vm1666_vm2 = vcmp.eq.s32.totalorder %v1664_v9, 0 }
 0x1f2   :  { %v1335_v25 = vor.u32 4788187, %v1334_v23  ;;  %v1885_v26 = vadd.s32 4294967294, %v1427_v24  ;;  %v1338_v29 = vcvt.s32.f32 %v1331_v21 }
 0x1f4   :  { %v1336_v27 = vand.u32 2147483647, %v1335_v25  ;;  %vm1886_vm3 = vcmp.lt.s32.totalorder %v1885_v26, 0 }
 0x1f5   :  { %v1430_v31 = vsel %vm1886_vm3, 0, %v1885_v26 }
 0x1f6   :  { %v1339_v30 = vmul.f32 %v1338_v29, %v1336_v27  ;;  %v1431_v3 = vsub.s32 32, %v1430_v31  ;;  %v1435_v6 = vsub.s32 4294967266, %v1430_v31  ;;  %v1432_v32 = vshll.u32 %v1423_v7, %v1430_v31 }
 0x1f7   :  { %v1452_v7 = vand.u32 3, %v1448_v56 }
 0x1f8   :  { %v1340_v12 = vxor.u32 2147483648, %v1339_v30  ;;  %v1433_v34 = vshrl.u32 %v1415_v33, %v1431_v3  ;;  %v1436_v36 = vadd.s32 127, %v1435_v6 }
 0x1f9   :  { %vm1457_vm15 = vcmp.eq.s32.totalorder %v1452_v7, 2  ;;  %vm1454_vm1 = vcmp.eq.s32.totalorder %v1452_v7, 0  ;;  %vm1453_vm3 = vcmp.lt.s32.totalorder %v1452_v7, 2 }
 0x1fa   :  { %v1341_v37 = vsel %vm1258_vm4, %v1340_v12, %v1339_v30  ;;  %v1434_v41 = vor.u32 %v1433_v34, %v1432_v32  ;;  %v1437_v42 = vshll.u32 %v1436_v36, 23  ;;  %vm1665_vm4 = vcmp.lt.s32.totalorder %v1664_v9, 2 }
 0x1fb   :  { %v1344_v39 = vsel %vm1257_vm5, %v2311_v4, %v1341_v37  ;;  %vm1451_vm5 = vweird.f32 %v2315_v15 }
 0x1fc   :  { %2149 = vcosq.f32 %v1344_v39  ;;  %v1438_v38 = vor.u32 4788187, %v1437_v42  ;;  %v1441_v13 = vcvt.s32.f32 %v1434_v41 }
 0x1fd   :  { %2151 = vsinq.f32 %v1344_v39 }
 0x1fe   :  { %v1439_v45 = vand.u32 2147483647, %v1438_v38 }
 0x200   :  { %v1442_v46 = vmul.f32 %v1441_v13, %v1439_v45 }
 0x202   :  { %v1443_v47 = vxor.u32 2147483648, %v1442_v46 }
 0x204   :  { %v1444_v8 = vsel %vm1361_vm6, %v1443_v47, %v1442_v46 }
 0x205   :  { %v1447_v51 = vsel %vm1360_vm7, %v2315_v15, %v1444_v8 }
 0x206   :  { %2153 = vcosq.f32 %v1447_v51 }
 0x207   :  { %2155 = vsinq.f32 %v1447_v51 }
 0x209   :  { %v2150_v28 = vpop.eup %2149 }
 0x20a   :  { %v2152_v54 = vpop.eup %2151  ;;  %v1355_v55 = vxor.u32 2147483648, %v2150_v28 }
 0x20b   :  { %v1352_v57 = vxor.u32 2147483648, %v2152_v54 }
 0x20c   :  { %v1356_v58 = vsel %vm1354_vm8, %v1355_v55, %v2152_v54  ;;  %v1567_v59 = vsel %vm1565_vm9, %v1355_v55, %v2152_v54 }
 0x20d   :  { %v1353_v22 = vsel %vm1351_vm10, %v2150_v28, %v1352_v57  ;;  %v1564_v60 = vsel %vm1562_vm11, %v2150_v28, %v1352_v57 }
 0x20e   :  { %v1357_v61 = vsel %vm1350_vm12, %v1353_v22, %v1356_v58  ;;  %v1568_v62 = vsel %vm1561_vm13, %v1564_v60, %v1567_v59 }
 0x20f   :  { %v1358_v5 = vsel %vm1348_vm14, nan, %v1357_v61  ;;  %v1569_v0 = vsel %vm1348_vm14, nan, %v1568_v62 }
 0x210   :  { %v1462_v1 = vmul.f32 %v1358_v5, %v2306_v40  ;;  %v1674_v2 = vmul.f32 %v1569_v0, %v2306_v40 }
 0x212   :  { %1464 = vst [vmem:[#allocation6] sm:$0xff] %v1462_v1  ;;  %1676 = vst [vmem:[#allocation7] sm:$0xff] %v1674_v2 }
 0x213   :  { %v2154_v10 = vpop.eup %2153 }
 0x214   :  { %v2156_v11 = vpop.eup %2155  ;;  %v1458_v16 = vxor.u32 2147483648, %v2154_v10 }
 0x215   :  { %v1455_v17 = vxor.u32 2147483648, %v2156_v11 }
 0x216   :  { %v1459_v4 = vsel %vm1457_vm15, %v1458_v16, %v2156_v11  ;;  %v1671_v18 = vsel %vm1669_vm0, %v1458_v16, %v2156_v11 }
 0x217   :  { %v1456_v19 = vsel %vm1454_vm1, %v2154_v10, %v1455_v17  ;;  %v1668_v40 = vsel %vm1666_vm2, %v2154_v10, %v1455_v17 }
 0x218   :  { %v1460_v20 = vsel %vm1453_vm3, %v1456_v19, %v1459_v4  ;;  %v1672_v21 = vsel %vm1665_vm4, %v1668_v40, %v1671_v18 }
 0x219   :  { %v1461_v23 = vsel %vm1451_vm5, nan, %v1460_v20  ;;  %v1673_v24 = vsel %vm1451_vm5, nan, %v1672_v21 }
 0x21a   :  { %v1463_v25 = vmul.f32 %v1461_v23, %v2308_v43  ;;  %v1675_v26 = vmul.f32 %v1673_v24, %v2308_v43 }
 0x21c   :  { %1465 = vst [vmem:[#allocation6 + $0x8] sm:$0xff] %v1463_v25  ;;  %1677 = vst [vmem:[#allocation7 + $0x8] sm:$0xff] %v1675_v26 }
 0x21d   :  { %2188 = shalt.err (!%p2185_p9)
}
 0x21e   :  { %s2236_s26 = smov 128   ;;  %s2237_s27 = smov 8  }
 0x21f   :  { %1689 = dma.vmem_to_hbm [thread:$0]  %s1684_s1, 256, %s2383_s2, [#allocation5], %s2236_s26, %s2236_s26, %s2237_s27  }
 0x220   :  { %s2197_s30 = scalar_lea.vmem %s1696_s24, 256  ;;  %p2202_p11 = scmp.lt.s32.totalorder %s1696_s24, %s1696_s24 }
 0x221   :  { %p2198_p10 = scmp.ne.s32.totalorder %s1696_s24, %s2197_s30  ;;  %p2203_p12 = scmp.lt.s32.totalorder %s2197_s30, %s2197_s30 }
 0x223   :  { %p2204_p13 = por %p2203_p12, %p2202_p11 }
 0x225   :  { %p2205_p0 = pnand %p2204_p13, %p2198_p10 }
 0x227   :  { %2208 = shalt.err (!%p2205_p0)
}
 0x228   :  { %1701 = dma.vmem_to_hbm [thread:$0]  %s1696_s24, 256, %s2384_s3, [#allocation8], %s2236_s26, %s2236_s26, %s2237_s27  }
 0x229   :  { %2219 = dma.done.wait [#allocation5], 256  }
 0x22a   :  { %2220 = vsyncadd [#allocation5], 4294967040 }
 0x22b   :  { %2221 = dma.done.wait [#allocation8], 256  }
 0x22c   :  { %2222 = vsyncadd [#allocation8], 4294967040 }
 0x22d   :  { %1708 = vsyncpa [#allocation4], 1 }
 0x22e   :  { %1709 = vsyncpa [#allocation5], 1 }
 0x22f   :  { %1710 = vsyncpa [#allocation8], 1 }

</bundles_post_ra>
